<compile_context>
chip_gen: v7x
topology: tpu7x:2x2x1
jax: 0.10.0
libtpu: 0.0.40
codegen_flags: <defaults>
</compile_context>

<pallas_src>
import functools

import jax
import jax.numpy as jnp
from jax.experimental import pallas as pl
from jax.experimental.pallas import tpu as pltpu


def _conv_in_elu_kernel(x_ref, w_ref, gb_ref, o_ref, *,
                        ksize, stride, h_out, w_out, eps, compute_dtype):
    """One batch sample per grid step.

    x_ref : (1, Hp, Wp, Cin)            reflect-padded input (f32)
    w_ref : (K*K*Cin, Cout_pad)         conv weight, taps folded, zero-padded Cout (bf16)
    gb_ref: (2, Cout_pad)               row 0 = gamma, row 1 = beta (f32, zero-padded)
    o_ref : (1, Ho*Wo, Cout_pad)        ELU(InstanceNorm(conv)) output (lane-dense)
    """
    cin = x_ref.shape[-1]
    xb = x_ref[0]                                           # (Hp, Wp, Cin)

    # im2col in-register: K*K shifted (optionally strided) windows, concatenated on
    # the channel axis.  Row ordering matches weight_hwio.reshape(K*K*Cin, Cout).
    patches = []
    for kh in range(ksize):
        for kw in range(ksize):
            patches.append(
                jax.lax.slice(
                    xb,
                    (kh, kw, 0),
                    (kh + (h_out - 1) * stride + 1,
                     kw + (w_out - 1) * stride + 1,
                     cin),
                    (stride, stride, 1),
                )                                            # (Ho, Wo, Cin)
            )
    lhs = jnp.concatenate(patches, axis=-1)                  # (Ho, Wo, K*K*Cin)
    lhs = lhs.reshape(h_out * w_out, ksize * ksize * cin)    # collapse leading dims only

    # Single deep MXU matmul: bf16 operands, f32 accumulation, lane-dense (padded) Cout.
    y = jnp.dot(lhs.astype(compute_dtype), w_ref[...],
                preferred_element_type=jnp.float32)          # (Ho*Wo, Cout_pad) f32

    # InstanceNorm2d (biased variance, eps inside rsqrt), single-pass stats.
    # The conv bias is omitted: it is cancelled exactly by the mean subtraction here.
    inv_m = 1.0 / float(h_out * w_out)
    mean = jnp.sum(y, axis=0, keepdims=True) * inv_m
    var = jnp.maximum(jnp.sum(y * y, axis=0, keepdims=True) * inv_m - mean * mean, 0.0)
    gamma = gb_ref[0:1, :]
    beta = gb_ref[1:2, :]
    scale = jax.lax.rsqrt(var + eps) * gamma                 # rsqrt -> EUP slot
    z = y * scale + (beta - mean * scale)

    # ELU, alpha = 1.
    out = jnp.where(z > 0, z, jnp.exp(jnp.minimum(z, 0.0)) - 1.0)

    o_ref[0] = out.astype(o_ref.dtype)


def conv_block(x_nchw, weight_hwio, bias, gamma, beta, *,
               kernel_size, stride, eps=1e-5, compute_dtype=jnp.bfloat16):
    """Equivalent of the PyTorch `conv` module forward (NCHW in / NCHW out)."""
    n, cin, h, w = x_nchw.shape
    kh_, kw_, wcin, cout = weight_hwio.shape
    assert kh_ == kernel_size and kw_ == kernel_size and wcin == cin
    # The conv bias is mathematically cancelled by InstanceNorm's mean subtraction,
    # so it is not fed to the kernel (identical results, less work).
    del bias

    pad = (kernel_size - 1) // 2
    x = jnp.transpose(x_nchw, (0, 2, 3, 1))                                  # NCHW -> NHWC
    xp = jnp.pad(x, ((0, 0), (pad, pad), (pad, pad), (0, 0)), mode="reflect")
    hp, wp = h + 2 * pad, w + 2 * pad
    h_out = (hp - kernel_size) // stride + 1
    w_out = (wp - kernel_size) // stride + 1

    cout_p = ((cout + 127) // 128) * 128                     # lane-dense padded Cout

    # Weight: HWIO -> (K*K*Cin, Cout_pad), zero-padded channels, bf16 for the MXU.
    w_mat = weight_hwio.reshape(kernel_size * kernel_size * cin, cout)
    w_mat = jnp.pad(w_mat, ((0, 0), (0, cout_p - cout))).astype(compute_dtype)

    # gamma/beta fused into a single (2, Cout_pad) f32 array (padded lanes -> output 0).
    gb = jnp.stack([
        jnp.pad(gamma.astype(jnp.float32), (0, cout_p - cout)),
        jnp.pad(beta.astype(jnp.float32), (0, cout_p - cout)),
    ])

    kernel = functools.partial(
        _conv_in_elu_kernel,
        ksize=kernel_size, stride=stride, h_out=h_out, w_out=w_out,
        eps=eps, compute_dtype=compute_dtype,
    )

    out_flat = pl.pallas_call(
        kernel,
        out_shape=jax.ShapeDtypeStruct((n, h_out * w_out, cout_p), x_nchw.dtype),
        grid=(n,),
        in_specs=[
            pl.BlockSpec((1, hp, wp, cin), lambda i: (i, 0, 0, 0)),
            pl.BlockSpec((kernel_size * kernel_size * cin, cout_p), lambda i: (0, 0)),
            pl.BlockSpec((2, cout_p), lambda i: (0, 0)),
        ],
        out_specs=pl.BlockSpec((1, h_out * w_out, cout_p), lambda i: (i, 0, 0)),
        compiler_params=pltpu.CompilerParams(dimension_semantics=("parallel",)),
    )(xp, w_mat, gb)

    out = out_flat.reshape(n, h_out, w_out, cout_p)[..., :cout]
    return jnp.transpose(out, (0, 3, 1, 2))                                   # NHWC -> NCHW


def _reference(x_nchw, weight_hwio, bias, gamma, beta, kernel_size, stride, eps=1e-5):
    """Plain-JAX (f32) reference of the same forward pass."""
    pad = (kernel_size - 1) // 2
    x = jnp.transpose(x_nchw, (0, 2, 3, 1))
    xp = jnp.pad(x, ((0, 0), (pad, pad), (pad, pad), (0, 0)), mode="reflect")
    y = jax.lax.conv_general_dilated(
        xp, weight_hwio, window_strides=(stride, stride), padding="VALID",
        dimension_numbers=("NHWC", "HWIO", "NHWC"),
    ) + bias.reshape(1, 1, 1, -1)
    mean = jnp.mean(y, axis=(1, 2), keepdims=True)
    var = jnp.mean((y - mean) ** 2, axis=(1, 2), keepdims=True)
    z = (y - mean) * jax.lax.rsqrt(var + eps)
    z = z * gamma.reshape(1, 1, 1, -1) + beta.reshape(1, 1, 1, -1)
    out = jnp.where(z > 0, z, jnp.exp(jnp.minimum(z, 0.0)) - 1.0)
    return jnp.transpose(out, (0, 3, 1, 2))


if __name__ == "__main__":
    key = jax.random.PRNGKey(0)
    k1, k2, k3, k4, k5 = jax.random.split(key, 5)

    N, Cin, H, W = 2, 4, 16, 16
    Cout, K, STRIDE = 8, 3, 1

    x = jax.random.normal(k1, (N, Cin, H, W), jnp.float32)                 # NCHW input
    weight = 0.1 * jax.random.normal(k2, (K, K, Cin, Cout), jnp.float32)   # HWIO conv weight
    bias = 0.1 * jax.random.normal(k3, (Cout,), jnp.float32)               # conv bias
    gamma = 1.0 + 0.1 * jax.random.normal(k4, (Cout,), jnp.float32)        # InstanceNorm weight
    beta = 0.1 * jax.random.normal(k5, (Cout,), jnp.float32)               # InstanceNorm bias

    out = conv_block(x, weight, bias, gamma, beta, kernel_size=K, stride=STRIDE)
    out = jax.block_until_ready(out)

    ref = _reference(x, weight, bias, gamma, beta, K, STRIDE)
    assert out.shape == (N, Cout, H, W)
    assert jnp.allclose(out, ref, atol=2e-2, rtol=2e-2), "mismatch vs reference"

    print("KERNEL_OK")
</pallas_src>

<mosaic_0001>
module attributes {stable_mosaic.version = 11 : i64} {
  func.func @_conv_in_elu_kernel(%arg0: i32, %arg1: memref<1x18x18x4xf32, #tpu.memory_space<vmem>>, %arg2: memref<36x128xbf16, #tpu.memory_space<vmem>>, %arg3: memref<2x128xf32, #tpu.memory_space<vmem>>, %arg4: memref<1x256x128xf32, #tpu.memory_space<vmem>>) attributes {dimension_semantics = [#tpu.dimension_semantics<parallel>], iteration_bounds = array<i64: 2>, scalar_prefetch = 0 : i64, scratch_operands = 0 : i64, tpu.core_type = #tpu.core_type<tc>, window_params = [{transform_indices = @transform_0, window_bounds = array<i64: 1, 18, 18, 4>}, {pipeline_mode = #tpu.pipeline_mode<synchronous>, transform_indices = @transform_1, window_bounds = array<i64: 36, 128>}, {pipeline_mode = #tpu.pipeline_mode<synchronous>, transform_indices = @transform_2, window_bounds = array<i64: 2, 128>}, {transform_indices = @transform_3, window_bounds = array<i64: 1, 256, 128>}]} {
    %c0 = arith.constant 0 : index
    %c0_0 = arith.constant 0 : index
    %c0_1 = arith.constant 0 : index
    %c0_2 = arith.constant 0 : index
    %0 = vector.load %arg1[%c0, %c0_0, %c0_1, %c0_2] : memref<1x18x18x4xf32, #tpu.memory_space<vmem>>, vector<1x18x18x4xf32>
    %1 = vector.shape_cast %0 : vector<1x18x18x4xf32> to vector<18x18x4xf32>
    %2 = vector.extract_strided_slice %1 {offsets = [0, 0, 0], sizes = [16, 16, 4], strides = [1, 1, 1]} : vector<18x18x4xf32> to vector<16x16x4xf32>
    %3 = vector.extract_strided_slice %1 {offsets = [0, 1, 0], sizes = [16, 16, 4], strides = [1, 1, 1]} : vector<18x18x4xf32> to vector<16x16x4xf32>
    %4 = vector.extract_strided_slice %1 {offsets = [0, 2, 0], sizes = [16, 16, 4], strides = [1, 1, 1]} : vector<18x18x4xf32> to vector<16x16x4xf32>
    %5 = vector.extract_strided_slice %1 {offsets = [1, 0, 0], sizes = [16, 16, 4], strides = [1, 1, 1]} : vector<18x18x4xf32> to vector<16x16x4xf32>
    %6 = vector.extract_strided_slice %1 {offsets = [1, 1, 0], sizes = [16, 16, 4], strides = [1, 1, 1]} : vector<18x18x4xf32> to vector<16x16x4xf32>
    %7 = vector.extract_strided_slice %1 {offsets = [1, 2, 0], sizes = [16, 16, 4], strides = [1, 1, 1]} : vector<18x18x4xf32> to vector<16x16x4xf32>
    %8 = vector.extract_strided_slice %1 {offsets = [2, 0, 0], sizes = [16, 16, 4], strides = [1, 1, 1]} : vector<18x18x4xf32> to vector<16x16x4xf32>
    %9 = vector.extract_strided_slice %1 {offsets = [2, 1, 0], sizes = [16, 16, 4], strides = [1, 1, 1]} : vector<18x18x4xf32> to vector<16x16x4xf32>
    %10 = vector.extract_strided_slice %1 {offsets = [2, 2, 0], sizes = [16, 16, 4], strides = [1, 1, 1]} : vector<18x18x4xf32> to vector<16x16x4xf32>
    %11 = tpu.concatenate %2, %3, %4, %5, %6, %7, %8, %9, %10 in 2 : vector<16x16x4xf32>, vector<16x16x4xf32>, vector<16x16x4xf32>, vector<16x16x4xf32>, vector<16x16x4xf32>, vector<16x16x4xf32>, vector<16x16x4xf32>, vector<16x16x4xf32>, vector<16x16x4xf32> -> vector<16x16x36xf32>
    %12 = vector.shape_cast %11 : vector<16x16x36xf32> to vector<256x36xf32>
    %13 = arith.truncf %12 : vector<256x36xf32> to vector<256x36xbf16>
    %c0_3 = arith.constant 0 : index
    %c0_4 = arith.constant 0 : index
    %14 = vector.load %arg2[%c0_3, %c0_4] : memref<36x128xbf16, #tpu.memory_space<vmem>>, vector<36x128xbf16>
    %cst = arith.constant dense<0.000000e+00> : vector<256x128xf32>
    %15 = tpu.matmul %13, %14, %cst {dimension_numbers = #tpu.dot_dimension_numbers<[1], [0], [0], [1], [0, 0, 1, 1], [], []>} : vector<256x36xbf16>, vector<36x128xbf16>, vector<256x128xf32> -> vector<256x128xf32>
    %cst_5 = arith.constant dense<0.000000e+00> : vector<128xf32>
    %16 = vector.multi_reduction <add>, %15, %cst_5 [0] : vector<256x128xf32> to vector<128xf32>
    %17 = vector.shape_cast %16 : vector<128xf32> to vector<1x128xf32>
    %cst_6 = arith.constant 3.906250e-03 : f32
    %18 = vector.broadcast %cst_6 : f32 to vector<1x128xf32>
    %19 = arith.mulf %17, %18 : vector<1x128xf32>
    %20 = arith.mulf %15, %15 : vector<256x128xf32>
    %cst_7 = arith.constant dense<0.000000e+00> : vector<128xf32>
    %21 = vector.multi_reduction <add>, %20, %cst_7 [0] : vector<256x128xf32> to vector<128xf32>
    %22 = vector.shape_cast %21 : vector<128xf32> to vector<1x128xf32>
    %cst_8 = arith.constant 3.906250e-03 : f32
    %23 = vector.broadcast %cst_8 : f32 to vector<1x128xf32>
    %24 = arith.mulf %22, %23 : vector<1x128xf32>
    %25 = arith.mulf %19, %19 : vector<1x128xf32>
    %26 = arith.subf %24, %25 : vector<1x128xf32>
    %cst_9 = arith.constant 0.000000e+00 : f32
    %27 = vector.broadcast %cst_9 : f32 to vector<1x128xf32>
    %28 = arith.maximumf %26, %27 : vector<1x128xf32>
    %c0_10 = arith.constant 0 : index
    %c0_11 = arith.constant 0 : index
    %29 = vector.load %arg3[%c0_10, %c0_11] : memref<2x128xf32, #tpu.memory_space<vmem>>, vector<1x128xf32>
    %c1 = arith.constant 1 : index
    %c0_12 = arith.constant 0 : index
    %30 = vector.load %arg3[%c1, %c0_12] : memref<2x128xf32, #tpu.memory_space<vmem>>, vector<1x128xf32>
    %cst_13 = arith.constant 9.99999974E-6 : f32
    %31 = vector.broadcast %cst_13 : f32 to vector<1x128xf32>
    %32 = arith.addf %28, %31 : vector<1x128xf32>
    %33 = math.rsqrt %32 : vector<1x128xf32>
    %34 = arith.mulf %33, %29 : vector<1x128xf32>
    %35 = vector.broadcast %34 : vector<1x128xf32> to vector<256x128xf32>
    %36 = arith.mulf %15, %35 : vector<256x128xf32>
    %37 = arith.mulf %19, %34 : vector<1x128xf32>
    %38 = arith.subf %30, %37 : vector<1x128xf32>
    %39 = vector.broadcast %38 : vector<1x128xf32> to vector<256x128xf32>
    %40 = arith.addf %36, %39 : vector<256x128xf32>
    %cst_14 = arith.constant 0.000000e+00 : f32
    %41 = vector.broadcast %cst_14 : f32 to vector<256x128xf32>
    %42 = arith.cmpf ogt, %40, %41 : vector<256x128xf32>
    %cst_15 = arith.constant 0.000000e+00 : f32
    %43 = vector.broadcast %cst_15 : f32 to vector<256x128xf32>
    %44 = arith.minimumf %40, %43 : vector<256x128xf32>
    %45 = math.exp %44 : vector<256x128xf32>
    %cst_16 = arith.constant 1.000000e+00 : f32
    %46 = vector.broadcast %cst_16 : f32 to vector<256x128xf32>
    %47 = arith.subf %45, %46 : vector<256x128xf32>
    %48 = arith.select %42, %40, %47 : vector<256x128xi1>, vector<256x128xf32>
    %c0_17 = arith.constant 0 : index
    %c0_18 = arith.constant 0 : index
    %c0_19 = arith.constant 0 : index
    %49 = vector.load %arg4[%c0_17, %c0_18, %c0_19] : memref<1x256x128xf32, #tpu.memory_space<vmem>>, vector<1x256x128xf32>
    %50 = vector.shape_cast %49 : vector<1x256x128xf32> to vector<256x128xf32>
    %51 = vector.shape_cast %48 : vector<256x128xf32> to vector<1x256x128xf32>
    tpu.vector_store %arg4[%c0_17, %c0_18, %c0_19], %51 {strides = array<i32>} : memref<1x256x128xf32, #tpu.memory_space<vmem>>, vector<1x256x128xf32>,
    return
  }
  func.func @transform_0(%arg0: i32) -> (i32, i32, i32, i32) {
    %c0_i32 = arith.constant 0 : i32
    %c0_i32_0 = arith.constant 0 : i32
    %c0_i32_1 = arith.constant 0 : i32
    %c0_i32_2 = arith.constant 0 : i32
    return %arg0, %c0_i32, %c0_i32_0, %c0_i32_1 : i32, i32, i32, i32
  }
  func.func @transform_1(%arg0: i32) -> (i32, i32) {
    %c0_i32 = arith.constant 0 : i32
    %c0_i32_0 = arith.constant 0 : i32
    %c0_i32_1 = arith.constant 0 : i32
    return %c0_i32, %c0_i32_0 : i32, i32
  }
  func.func @transform_2(%arg0: i32) -> (i32, i32) {
    %c0_i32 = arith.constant 0 : i32
    %c0_i32_0 = arith.constant 0 : i32
    %c0_i32_1 = arith.constant 0 : i32
    return %c0_i32, %c0_i32_0 : i32, i32
  }
  func.func @transform_3(%arg0: i32) -> (i32, i32, i32) {
    %c0_i32 = arith.constant 0 : i32
    %c0_i32_0 = arith.constant 0 : i32
    %c0_i32_1 = arith.constant 0 : i32
    return %arg0, %c0_i32, %c0_i32_0 : i32, i32, i32
  }
}

</mosaic_0001>

<bundles_post_ra>
// kernel: tpu_custom_call.1
= control target key start
LH: loop header
LB: loop body
LE: loop exit
PB: predicated region body
PF: predicated region fallthrough
CT: control target
= control target key end

     0   :  { %8 = vsyncpa [#allocation3], 0  ;;  %s4986_s0 = inlined_call_operand.vmem [shape: f32[2,18,18,4], index: 0, kind: input, shape index: {}]   ;;  %s4987_s1 = inlined_call_operand.vmem [shape: bf16[36,128], index: 1, kind: input, shape index: {}]   ;;  %s4988_s2 = inlined_call_operand.vmem [shape: f32[2,128], index: 2, kind: input, shape index: {}]   ;;  %s4989_s3 = inlined_call_operand.hbm [shape: f32[2,256,128], index: 3, kind: output, shape index: {}]  }
   0x1   :  { %10 = vsyncpa [#allocation3 + $0x1], 0  ;;  %s3240_s12 = smov 0   ;;  %s3242_s13 = smov 0  }
   0x2   :  { %s3244_s14 = smov 0   ;;  %s3246_s15 = smov 0  }
   0x3 LB: > { %s3261_s16 = sadd.s32 4294967295, %s3208_s15   ;;  %s2232_s17 = sadd.s32 4294967294, %s3208_s15   ;;  %s3208_s15 = sphi %s3246_s15, %s5055_s15   ;;  %s3204_s14 = sphi %s3244_s14, %s5054_s14   ;;  %s3200_s13 = sphi %s3242_s13, %s5053_s13   ;;  %s3196_s12 = sphi %s3240_s12, %s5052_s12  }
   0x4   : > { %s3265_s18 = sadd.s32 1, %s3208_s15   ;;  %s91_s19 = sadd.s32 1, %s3204_s14 }
   0x5   : > { %s88_s20 = ssub.s32 %s3208_s15, %s3265_s18  ;;  %p101_p0 = scmp.ne.s32.totalorder %s3204_s14, %s3200_s13 }
   0x6   : > { %p89_p1 = scmp.eq.s32.totalorder %s88_s20, 0  ;;  %p102_p2 = scmp.eq.s32.totalorder %s3261_s16, 1 }
   0x7   : > { %p107_p3 = scmp.ne.s32.totalorder %s3200_s13, %s3196_s12  ;;  %p108_p4 = scmp.eq.s32.totalorder %s2232_s17, 1 }
   0x8   : > { %s3276_s21 = scalar_select %p89_p1, %s3204_s14, %s91_s19  }
   0x9   : > { %p3278_p5 = por %p102_p2, %p101_p0  ;;  %p3282_p6 = por %p108_p4, %p107_p3 }
   0xa   : > { %p2235_p7 = scmp.ge.s32.totalorder %s3208_s15, 1  ;;  %p140_p8 = scmp.lt.s32.totalorder %s3208_s15, 3 }
   0xc   : > { %p141_p9 = pnand %p2235_p7, %p140_p8 }
   0xe   : > { %144 = sbr.rel (%p141_p9) target bundleno = 751 (0x2ef), region = 32 }
  0x15   : > { %p164_p10 = scmp.lt.s32.totalorder %s3261_s16, 1  ;;  %vm272_vm0 = vcmask 1046528   ;;  %s3210_s29 = smov 4   ;;  %vm449_vm1 = vcmask 1045504   ;;  %vm1577_vm2 = vcmask 1041408   ;;  %vm1228_vm3 = vcmask 31744  }
  0x16   : > { %s3211_s30 = smov 8   ;;  %s3212_s4 = smov 12   ;;  %vm1261_vm4 = vcmask 64512   ;;  %vm1294_vm5 = vcmask 97280   ;;  %vm1327_vm6 = vcmask 130048   ;;  %vm1360_vm7 = vcmask 162816  }
  0x17   : > { %s165_s24 = scalar_select %p164_p10, %s3261_s16, 1  ;;  %vm1393_vm8 = vcmask 195584   ;;  %vm1426_vm9 = vcmask 228352   ;;  %vm1459_vm10 = vcmask 261120   ;;  %vm1528_vm11 = vcmask 293888  }
  0x18   : > { %s3213_s5 = smov 16   ;;  %s3214_s8 = smov 20  }
  0x19   : > { %s2360_s25 = smul.u32 432, %s165_s24  ;;  %s3215_s11 = smov 24  }
  0x1a   : > { %s3216_s20 = smov 28   ;;  %s3217_s24 = smov 32  }
  0x1b   : > { %s3293_s28 = scalar_lea.vmem %s4986_s0, %s2360_s25  ;;  %s2294_s6 = sshll.u32 %s3261_s16, 12 }
  0x1c   : > { %v3296_v0 = vld [vmem:[%s3293_s28 + $0x30] sm:$0xff]  ;;  %v3299_v1 = vld [vmem:[%s3293_s28 + $0x38] sm:$0xff]  ;;  %v3302_v2 = vld [vmem:[%s3293_s28 + $0x40] sm:$0x3]  ;;  %s4932_s9 = scalar_lea.hbm %s4989_s3, %s2294_s6  ;;  %s3218_s17 = smov [#allocation2]  }
  0x1d   : > { %v283_v3 = vrot.slane %v3296_v0, 1  ;;  %v284_v4 = vrot.slane %v3299_v1, 1  ;;  %v286_v5 = vrot.slane %v3302_v2, 1  ;;  %v3308_v6 = vld [vmem:[%s3293_s28] sm:$0xff]  ;;  %v3311_v7 = vld [vmem:[%s3293_s28 + $0x8] sm:$0xff]  ;;  %v3322_v12 = vld [vmem:[%s3293_s28 + $0x50] sm:$0xff] }
  0x1e   : > { %v3314_v8 = vld [vmem:[%s3293_s28 + $0x10] sm:$0x3]  ;;  %v273_v9 = vrot.slane %v3308_v6, 1  ;;  %v274_v10 = vrot.slane %v3311_v7, 1  ;;  %v3319_v11 = vld [vmem:[%s3293_s28 + $0x48] sm:$0xff]  ;;  %v3331_v17 = vld [vmem:[%s3293_s28 + $0x18] sm:$0xff] }
  0x1f   : > { %v285_v13 = vsel %vm272_vm0, %v283_v3, %v284_v4  ;;  %v287_v14 = vsel %vm272_vm0, %v284_v4, %v286_v5  ;;  %v276_v15 = vrot.slane %v3314_v8, 1  ;;  %v3328_v16 = vld [vmem:[%s3293_s28 + $0x58] sm:$0x3]  ;;  %v3334_v18 = vld [vmem:[%s3293_s28 + $0x20] sm:$0xff]  ;;  %v288_v21 = vrot.slane %v3319_v11, 1  ;;  %v3366_v36 = vld [vmem:[%s3293_s28 + $0x68] sm:$0xff] }
  0x20   : > { %v3336_v19 = vpack.i.bf16 %v287_v14, %v285_v13  ;;  %v275_v20 = vsel %vm272_vm0, %v273_v9, %v274_v10  ;;  %v289_v22 = vrot.slane %v3322_v12, 1  ;;  %v3342_v23 = vld [vmem:[%s3293_s28 + $0x28] sm:$0x3]  ;;  %v3345_v24 = vld [vmem:[%s3293_s28 + $0x78] sm:$0xff]  ;;  %v3348_v25 = vld [vmem:[%s3293_s28 + $0x80] sm:$0xff]  ;;  %v291_v27 = vrot.slane %v3328_v16, 1 }
  0x21   : > { %v277_v26 = vsel %vm272_vm0, %v274_v10, %v276_v15  ;;  %v278_v28 = vrot.slane %v3331_v17, 1  ;;  %v279_v29 = vrot.slane %v3334_v18, 1  ;;  %v3355_v30 = vld [vmem:[%s3293_s28 + $0x88] sm:$0x3]  ;;  %v3358_v31 = vld [vmem:[%s3293_s28 + $0x60] sm:$0xff]  ;;  %v281_v34 = vrot.slane %v3342_v23, 1 }
  0x22   : > { %2420 = vrot.lane.b32.xlu1 %v3336_v19, %s3210_s29  ;;  %v2409_v32 = vpack.i.bf16 %v277_v26, %v275_v20  ;;  %v290_v33 = vsel %vm272_vm0, %v288_v21, %v289_v22  ;;  %v298_v35 = vrot.slane %v3345_v24, 1  ;;  %v3369_v37 = vld [vmem:[%s3293_s28 + $0x70] sm:$0x3]  ;;  %v292_v38 = vsel %vm272_vm0, %v289_v22, %v291_v27  ;;  %v3376_v42 = vld [vmem:[%s3293_s28 + $0xa8] sm:$0xff]  ;;  %v3388_v48 = vld [vmem:[%s3293_s28 + $0xb8] sm:$0x3] }
  0x23   : > { %v280_v39 = vsel %vm272_vm0, %v278_v28, %v279_v29  ;;  %v299_v40 = vrot.slane %v3348_v25, 1  ;;  %v301_v41 = vrot.slane %v3355_v30, 1  ;;  %v3379_v43 = vld [vmem:[%s3293_s28 + $0xb0] sm:$0xff]  ;;  %v3382_v44 = vpack.i.bf16 %v292_v38, %v290_v33  ;;  %v3394_v50 = vld [vmem:[%s3293_s28 + $0x98] sm:$0xff]  ;;  %v3402_v55 = vld [vmem:[%s3293_s28 + $0xa0] sm:$0x3] }
  0x24   : > { %2410 = vrot.lane.b32.xlu0 %v2409_v32, %s3210_s29  ;;  %v282_v45 = vsel %vm272_vm0, %v279_v29, %v281_v34  ;;  %v293_v46 = vrot.slane %v3358_v31, 1  ;;  %v294_v47 = vrot.slane %v3366_v36, 1  ;;  %v3391_v49 = vld [vmem:[%s3293_s28 + $0x90] sm:$0xff]  ;;  %v296_v54 = vrot.slane %v3369_v37, 1  ;;  %v3405_v56 = vld [vmem:[%s3293_s28 + $0xd8] sm:$0xff]  ;;  %v3415_v61 = vld [vmem:[%s3293_s28 + $0xe0] sm:$0xff] }
  0x25   : > { %v3396_v51 = vpack.i.bf16 %v282_v45, %v280_v39  ;;  %v300_v52 = vsel %vm272_vm0, %v298_v35, %v299_v40  ;;  %v302_v53 = vsel %vm272_vm0, %v299_v40, %v301_v41  ;;  %v308_v59 = vrot.slane %v3376_v42, 1  ;;  %v3418_v62 = vld [vmem:[%s3293_s28 + $0xe8] sm:$0x3]  ;;  %v3425_v9 = vld [vmem:[%s3293_s28 + $0xc0] sm:$0xff]  ;;  %v3438_v21 = vld [vmem:[%s3293_s28 + $0xd0] sm:$0x3] }
  0x26   : > { %2425 = vrot.lane.b32.xlu1 %v3382_v44, %s3210_s29  ;;  %v3409_v57 = vpack.i.bf16 %v302_v53, %v300_v52  ;;  %v295_v58 = vsel %vm272_vm0, %v293_v46, %v294_v47  ;;  %v309_v60 = vrot.slane %v3379_v43, 1  ;;  %v297_v63 = vsel %vm272_vm0, %v294_v47, %v296_v54  ;;  %v3428_v10 = vld [vmem:[%s3293_s28 + $0xc8] sm:$0xff]  ;;  %v3448_v32 = vld [vmem:[%s3293_s28 + $0x110] sm:$0xff]  ;;  %v3458_v39 = vld [vmem:[%s3293_s28 + $0x118] sm:$0x3]  ;;  %s3150_s19 = sshll.u32 %s3218_s17, 4  ;;  %s3151_s19 = int_to_ptr.vmem [resolvable:$false] %s3150_s19 }
  0x27   : > { %v311_v3 = vrot.slane %v3388_v48, 1  ;;  %v303_v4 = vrot.slane %v3391_v49, 1  ;;  %v304_v5 = vrot.slane %v3394_v50, 1  ;;  %v3432_v13 = vpack.i.bf16 %v297_v63, %v295_v58  ;;  %v3445_v29 = vld [vmem:[%s3293_s28 + $0x108] sm:$0xff]  ;;  %5022 = vst [vmem:[#allocation7_spill] sm:$0xff] %v3448_v32  ;;  %5024 = vst [vmem:[#allocation9_spill] sm:$0xff] %v3458_v39 }
  0x28   : > { %5020 = vst [vmem:[#allocation5_spill] sm:$0xff] %v3409_v57  ;;  %2415 = vrot.lane.b32.xlu0 %v3396_v51, %s3210_s29  ;;  %v310_v14 = vsel %vm272_vm0, %v308_v59, %v309_v60  ;;  %v306_v15 = vrot.slane %v3402_v55, 1  ;;  %v318_v20 = vrot.slane %v3405_v56, 1  ;;  %v319_v27 = vrot.slane %v3415_v61, 1  ;;  %5021 = vst [vmem:[#allocation6_spill] sm:$0xff] %v3445_v29  ;;  %v3461_v40 = vld [vmem:[%s3293_s28 + $0xf0] sm:$0xff] }
  0x29   : > { %v312_v22 = vsel %vm272_vm0, %v309_v60, %v311_v3  ;;  %v305_v26 = vsel %vm272_vm0, %v303_v4, %v304_v5  ;;  %v321_v28 = vrot.slane %v3418_v62, 1  ;;  %v313_v35 = vrot.slane %v3425_v9, 1  ;;  %v3464_v41 = vld [vmem:[%s3293_s28 + $0xf8] sm:$0xff]  ;;  %v3470_v52 = vld [vmem:[%s3293_s28 + $0x100] sm:$0x3] }
  0x2a   : > { %2435 = vrot.lane.b32.xlu1 %v3409_v57, %s3210_s29  ;;  %v3452_v33 = vpack.i.bf16 %v312_v22, %v310_v14  ;;  %v307_v34 = vsel %vm272_vm0, %v304_v5, %v306_v15  ;;  %v314_v38 = vrot.slane %v3428_v10, 1  ;;  %v320_v45 = vsel %vm272_vm0, %v318_v20, %v319_v27  ;;  %v3473_v53 = vld [vmem:[%s3293_s28 + $0x138] sm:$0xff]  ;;  %v3483_v63 = vld [vmem:[%s3293_s28 + $0x140] sm:$0xff]  ;;  %v3486_v3 = vld [vmem:[%s3293_s28 + $0x148] sm:$0x3] }
  0x2b   : > { %v322_v46 = vsel %vm272_vm0, %v319_v27, %v321_v28  ;;  %v316_v47 = vrot.slane %v3438_v21, 1  ;;  %5025 = vst [vmem:[#allocation10_spill] sm:$0xff] %v3473_v53  ;;  %v3477_v54 = vpack.i.bf16 %v307_v34, %v305_v26  ;;  %v328_v59 = vrot.slane %v3445_v29, 1  ;;  %5026 = vst [vmem:[#allocation11_spill] sm:$0xff] %v3483_v63  ;;  %v3493_v20 = vld [vmem:[%s3293_s28 + $0x120] sm:$0xff]  ;;  %v3503_v34 = vld [vmem:[%s3293_s28 + $0x128] sm:$0xff] }
  0x2c   : > { %5023 = vst [vmem:[#allocation8_spill] sm:$0xff] %v3452_v33  ;;  %2430 = vrot.lane.b32.xlu0 %v3432_v13, %s3210_s29  ;;  %v315_v58 = vsel %vm272_vm0, %v313_v35, %v314_v38  ;;  %v329_v60 = vrot.slane %v3448_v32, 1  ;;  %5027 = vst [vmem:[#allocation12_spill] sm:$0xff] %v3486_v3  ;;  %v331_v5 = vrot.slane %v3458_v39, 1  ;;  %v323_v14 = vrot.slane %v3461_v40, 1  ;;  %v3535_v57 = vld [vmem:[%s3293_s28 + $0x158] sm:$0xff] }
  0x2d   : > { %v317_v4 = vsel %vm272_vm0, %v314_v38, %v316_v47  ;;  %v324_v15 = vrot.slane %v3464_v41, 1  ;;  %5028 = vst [vmem:[#allocation13_spill] sm:$0xff] %v3493_v20  ;;  %v3497_v22 = vpack.i.bf16 %v322_v46, %v320_v45  ;;  %v326_v27 = vrot.slane %v3470_v52, 1  ;;  %5029 = vst [vmem:[#allocation14_spill] sm:$0xff] %v3503_v34  ;;  %v3509_v45 = vld [vmem:[%s3293_s28 + $0x130] sm:$0x3] }
  0x2e   : > { %2445 = vrot.lane.b32.xlu1 %v3452_v33, %s3210_s29  ;;  %v330_v26 = vsel %vm272_vm0, %v328_v59, %v329_v60  ;;  %v338_v28 = vrot.slane %v3473_v53, 1  ;;  %v332_v35 = vsel %vm272_vm0, %v329_v60, %v331_v5  ;;  %v339_v38 = vrot.slane %v3483_v63, 1  ;;  %v3512_v46 = vld [vmem:[%s3293_s28 + $0x168] sm:$0xff]  ;;  %v3515_v59 = vld [vmem:[%s3293_s28 + $0x170] sm:$0xff]  ;;  %v3525_v63 = vld [vmem:[%s3293_s28 + $0x178] sm:$0x3] }
  0x2f   : > { %v341_v47 = vrot.slane %v3486_v3, 1  ;;  %5030 = vst [vmem:[#allocation15_spill] sm:$0xff] %v3512_v46  ;;  %5031 = vst [vmem:[#allocation16_spill] sm:$0xff] %v3515_v59  ;;  %v3519_v53 = vpack.i.bf16 %v317_v4, %v315_v58  ;;  %v325_v39 = vsel %vm272_vm0, %v323_v14, %v324_v15  ;;  %v327_v60 = vsel %vm272_vm0, %v324_v15, %v326_v27  ;;  %v3532_v33 = vld [vmem:[%s3293_s28 + $0x150] sm:$0xff]  ;;  %v3538_v58 = vld [vmem:[%s3293_s28 + $0x160] sm:$0x3] }
  0x30   : > { %2440 = vrot.lane.b32.xlu0 %v3477_v54, %s3210_s29  ;;  %v333_v5 = vrot.slane %v3493_v20, 1  ;;  %5032 = vst [vmem:[#allocation17_spill] sm:$0xff] %v3525_v63  ;;  %v3527_v3 = vpack.i.bf16 %v332_v35, %v330_v26  ;;  %v340_v32 = vsel %vm272_vm0, %v338_v28, %v339_v38  ;;  %v334_v29 = vrot.slane %v3503_v34, 1  ;;  %5033 = vst [vmem:[#allocation18_spill] sm:$0xff] %v3532_v33 }
  0x31   : > { %5034 = vst [vmem:[#allocation19_spill] sm:$0xff] %v3535_v57  ;;  %v342_v4 = vsel %vm272_vm0, %v339_v38, %v341_v47  ;;  %v336_v14 = vrot.slane %v3509_v45, 1  ;;  %v348_v15 = vrot.slane %v3512_v46, 1  ;;  %v349_v26 = vrot.slane %v3515_v59, 1 }
  0x32   : > { %2455 = vrot.lane.b32.xlu1 %v3497_v22, %s3210_s29  ;;  %v3546_v27 = vpack.i.bf16 %v327_v60, %v325_v39  ;;  %v335_v28 = vsel %vm272_vm0, %v333_v5, %v334_v29  ;;  %v351_v35 = vrot.slane %v3525_v63, 1  ;;  %v343_v20 = vrot.slane %v3532_v33, 1 }
  0x33   : > { %v337_v34 = vsel %vm272_vm0, %v334_v29, %v336_v14  ;;  %v344_v38 = vrot.slane %v3535_v57, 1  ;;  %v346_v47 = vrot.slane %v3538_v58, 1  ;;  %v453_v46 = vrot.slane %v3314_v8, 2 }
  0x34   : > { %2450 = vrot.lane.b32.xlu0 %v3519_v53, %s3210_s29  ;;  %v3557_v59 = vpack.i.bf16 %v342_v4, %v340_v32  ;;  %v3561_v39 = vpack.i.bf16 %v337_v34, %v335_v28  ;;  %v350_v60 = vsel %vm272_vm0, %v348_v15, %v349_v26  ;;  %v352_v29 = vsel %vm272_vm0, %v349_v26, %v351_v35 }
  0x35   : > { %v455_v5 = vrot.slane %v3331_v17, 2  ;;  %v456_v14 = vrot.slane %v3334_v18, 2  ;;  %v458_v63 = vrot.slane %v3342_v23, 2  ;;  %v450_v8 = vrot.slane %v3308_v6, 2 }
  0x36   : > { %2465 = vrot.lane.b32.xlu1 %v3527_v3, %s3210_s29  ;;  %v451_v32 = vrot.slane %v3311_v7, 2  ;;  %v345_v34 = vsel %vm272_vm0, %v343_v20, %v344_v38  ;;  %v347_v4 = vsel %vm272_vm0, %v344_v38, %v346_v47  ;;  %v465_v15 = vrot.slane %v3319_v11, 2 }
  0x37   : > { %v466_v26 = vrot.slane %v3322_v12, 2  ;;  %v468_v28 = vrot.slane %v3328_v16, 2  ;;  %v463_v35 = vrot.slane %v3302_v2, 2  ;;  %v3580_v23 = vpack.i.bf16 %v352_v29, %v350_v60 }
  0x38   : > { %2460 = vrot.lane.b32.xlu0 %v3546_v27, %s3210_s29  ;;  %v3582_v57 = vpack.i.bf16 %v347_v4, %v345_v34  ;;  %v457_v33 = vsel %vm449_vm1, %v455_v5, %v456_v14  ;;  %v459_v20 = vsel %vm449_vm1, %v456_v14, %v458_v63  ;;  %v452_v38 = vsel %vm449_vm1, %v450_v8, %v451_v32 }
  0x39   : > { %v454_v16 = vsel %vm449_vm1, %v451_v32, %v453_v46  ;;  %v467_v2 = vsel %vm449_vm1, %v465_v15, %v466_v26  ;;  %v460_v47 = vrot.slane %v3296_v0, 2  ;;  %v461_v60 = vrot.slane %v3299_v1, 2 }
  0x3a   : > { %2475 = vrot.lane.b32.xlu1 %v3557_v59, %s3210_s29  ;;  %v469_v29 = vsel %vm449_vm1, %v466_v26, %v468_v28  ;;  %v475_v34 = vrot.slane %v3345_v24, 2  ;;  %v476_v5 = vrot.slane %v3348_v25, 2  ;;  %v478_v63 = vrot.slane %v3355_v30, 2 }
  0x3b   : > { %v3599_v14 = vpack.i.bf16 %v459_v20, %v457_v33  ;;  %v470_v46 = vrot.slane %v3358_v31, 2  ;;  %v471_v8 = vrot.slane %v3366_v36, 2  ;;  %v473_v32 = vrot.slane %v3369_v37, 2 }
  0x3c   : > { %2470 = vrot.lane.b32.xlu0 %v3561_v39, %s3210_s29  ;;  %v2489_v4 = vpack.i.bf16 %v454_v16, %v452_v38  ;;  %v3606_v15 = vpack.i.bf16 %v469_v29, %v467_v2  ;;  %v462_v26 = vsel %vm449_vm1, %v460_v47, %v461_v60  ;;  %v464_v30 = vsel %vm449_vm1, %v461_v60, %v463_v35 }
  0x3d   : > { %v477_v28 = vsel %vm449_vm1, %v475_v34, %v476_v5  ;;  %v479_v33 = vsel %vm449_vm1, %v476_v5, %v478_v63  ;;  %v485_v20 = vrot.slane %v3376_v42, 2  ;;  %v472_v37 = vsel %vm449_vm1, %v470_v46, %v471_v8 }
  0x3e   : > { %2485 = vrot.lane.b32.xlu1 %v3580_v23, %s3210_s29  ;;  %v474_v38 = vsel %vm449_vm1, %v471_v8, %v473_v32  ;;  %v486_v16 = vrot.slane %v3379_v43, 2  ;;  %v488_v2 = vrot.slane %v3388_v48, 2  ;;  %v480_v35 = vrot.slane %v3391_v49, 2 }
  0x3f   : > { %v481_v47 = vrot.slane %v3394_v50, 2  ;;  %v483_v60 = vrot.slane %v3402_v55, 2  ;;  %v3623_v29 = vpack.i.bf16 %v464_v30, %v462_v26  ;;  %v3625_v34 = vpack.i.bf16 %v479_v33, %v477_v28 }
  0x40   : > { %2480 = vrot.lane.b32.xlu0 %v3582_v57, %s3210_s29  ;;  %v3627_v5 = vpack.i.bf16 %v474_v38, %v472_v37  ;;  %v487_v63 = vsel %vm449_vm1, %v485_v20, %v486_v16  ;;  %v489_v48 = vsel %vm449_vm1, %v486_v16, %v488_v2  ;;  %v495_v46 = vrot.slane %v3405_v56, 2  ;;  %s161_s29 = sand.u32 1, %s3200_s13  }
  0x41   : > { %v496_v8 = vrot.slane %v3415_v61, 2  ;;  %v482_v55 = vsel %vm449_vm1, %v480_v35, %v481_v47  ;;  %v484_v32 = vsel %vm449_vm1, %v481_v47, %v483_v60  ;;  %v490_v26 = vrot.slane %v3425_v9, 2  ;;  %s4944_s10 = scalar_lea.sflag [#allocation3], %s161_s29 }
  0x42   : > { %2495 = vrot.lane.b32.xlu1 %v3599_v14, %s3211_s30  ;;  %v491_v30 = vrot.slane %v3428_v10, 2  ;;  %v493_v28 = vrot.slane %v3438_v21, 2  ;;  %v3645_v33 = vpack.i.bf16 %v489_v48, %v487_v63  ;;  %v3647_v20 = vpack.i.bf16 %v484_v32, %v482_v55  ;;  %v3049_v55 = vld [vmem:[%s4987_s1] sm:$0xff]  }
  0x43   : > { %v497_v37 = vsel %vm449_vm1, %v495_v46, %v496_v8  ;;  %v500_v38 = vrot.slane %v3461_v40, 2  ;;  %v501_v2 = vrot.slane %v3464_v41, 2  ;;  %v503_v35 = vrot.slane %v3470_v52, 2  ;;  %2314 = vmatprep.subr.bf16.mxu0 %v3049_v55  ;;  %2352 = vmatprep.subr.bf16.mxu1 %v3049_v55 }
  0x44   : > { %2490 = vrot.lane.b32.xlu0 %v2489_v4, %s3211_s30  ;;  %v498_v4 = vrot.slane %v3418_v62, 2  ;;  %v492_v16 = vsel %vm449_vm1, %v490_v26, %v491_v30  ;;  %v494_v21 = vsel %vm449_vm1, %v491_v30, %v493_v28  ;;  %v2544_v52 = vpack.i.bf16 %v3334_v18, %v3331_v17  ;;  %2315 = vmatpush3.bf16.msra.mxu0 %v3049_v55 }
  0x45   : > { %v3662_v60 = vpack.i.bf16 %v494_v21, %v492_v16  ;;  %v502_v63 = vsel %vm449_vm1, %v500_v38, %v501_v2  ;;  %v504_v48 = vsel %vm449_vm1, %v501_v2, %v503_v35  ;;  %2355 = vmatpush3.bf16.msra.mxu1 %v3049_v55  ;;  %v2759_v32 = vpack.i.bf16 %v3415_v61, %v3405_v56  ;;  %v5039_v38 = vld [vmem:[#allocation7_spill] sm:$0xff]  ;;  %v5040_v21 = vld [vmem:[#allocation9_spill] sm:$0xff] }
  0x46   : > { %2505 = vrot.lane.b32.xlu1 %v3606_v15, %s3211_s30  ;;  %v499_v62 = vsel %vm449_vm1, %v496_v8, %v498_v4  ;;  %v3674_v46 = vpack.i.bf16 %v504_v48, %v502_v63  ;;  %v2549_v8 = vpack.i.bf16 %v3299_v1, %v3296_v0  ;;  %v3050_v0 = vld [vmem:[%s4987_s1 + $0x8] sm:$0xff]   ;;  %v3051_v1 = vld [vmem:[%s4987_s1 + $0x10] ss:$0 sps:$4 sm:$0x33]   ;;  %v506_v16 = vrot.slane %v5039_v38, 2 }
  0x47   : > { %v3660_v47 = vpack.i.bf16 %v499_v62, %v497_v37  ;;  %2316 = vmatprep.subr.bf16.mxu0 %v3050_v0  ;;  %2353 = vmatprep.subr.bf16.mxu1 %v3050_v0  ;;  %v508_v2 = vrot.slane %v5040_v21, 2 }
  0x48   : > { %2500 = vrot.lane.b32.xlu0 %v3623_v29, %s3211_s30  ;;  %2317 = vmatpush3.bf16.msra.mxu0 %v3050_v0 }
  0x49   : > { %2356 = vmatpush3.bf16.msra.mxu1 %v3050_v0  ;;  %2358 = vmatprep.subr.msk.bf16.mxu0 %vm1577_vm2, %v3051_v1  ;;  %v509_v48 = vsel %vm449_vm1, %v506_v16, %v508_v2  ;;  %v5041_v0 = vld [vmem:[#allocation13_spill] sm:$0xff] }
  0x4a   : > { %2515 = vrot.lane.b32.xlu1 %v3625_v34, %s3211_s30  ;;  %2359 = vmatprep.subr.msk.bf16.mxu1 %vm1577_vm2, %v3051_v1 }
  0x4c   : > { %2510 = vrot.lane.b32.xlu0 %v3627_v5, %s3211_s30 }
  0x4e   : > { %2525 = vrot.lane.b32.xlu1 %v3645_v33, %s3211_s30 }
  0x50   : > { %2520 = vrot.lane.b32.xlu0 %v3647_v20, %s3211_s30 }
  0x52   : > { %2535 = vrot.lane.b32.xlu1 %v3660_v47, %s3211_s30 }
  0x54   : > { %2530 = vrot.lane.b32.xlu0 %v3662_v60, %s3211_s30 }
  0x56   : > { %2545 = vrot.lane.b32.xlu1 %v2544_v52, %s3212_s4 }
  0x58   : > { %2540 = vrot.lane.b32.xlu0 %v3674_v46, %s3211_s30 }
  0x5a   : > { %2555 = vrot.lane.b32.xlu1 %v3396_v51, %s3213_s5  ;;  %v2579_v51 = vpack.i.bf16 %v3322_v12, %v3319_v11  ;;  %v2609_v11 = vpack.i.bf16 %v3366_v36, %v3358_v31  ;;  %v2639_v12 = vpack.i.bf16 %v3348_v25, %v3345_v24  ;;  %v2669_v31 = vpack.i.bf16 %v3394_v50, %v3391_v49  ;;  %v5036_v50 = vld [vmem:[#allocation8_spill] sm:$0xff] }
  0x5b   : > { %v2699_v25 = vpack.i.bf16 %v3379_v43, %v3376_v42 }
  0x5c   : > { %2550 = vrot.lane.b32.xlu0 %v2549_v8, %s3212_s4 }
  0x5e   : > { %2565 = vrot.lane.b32.xlu1 %v3599_v14, %s3214_s8  ;;  %v1579_v14 = vsel %vm1577_vm2, %v3051_v1, 0  ;;  %v510_v1 = vrot.slane %v5041_v0, 2 }
  0x5f   : > { %2319 = vmatpush3.bf16.msra.mxu0 %v1579_v14  ;;  %2357 = vmatpush3.bf16.msra.mxu1 %v1579_v14 }
  0x60   : > { %2560 = vrot.lane.b32.xlu0 %v3336_v19, %s3213_s5 }
  0x62   : > { %2575 = vrot.lane.b32.xlu1 %v2549_v8, %s3215_s11 }
  0x64   : > { %2570 = vrot.lane.b32.xlu0 %v3623_v29, %s3214_s8 }
  0x66   : > { %2585 = vrot.lane.b32.xlu1 %v3336_v19, %s3216_s20  ;;  %v5035_v19 = vld [vmem:[#allocation5_spill] sm:$0xff] }
  0x68   : > { %2580 = vrot.lane.b32.xlu0 %v2579_v51, %s3215_s11 }
  0x6a   : > { %2595 = vrot.lane.b32.xlu1 %v3623_v29, %s3217_s24 }
  0x6c   : > { %2590 = vrot.lane.b32.xlu0 %v3382_v44, %s3216_s20 }
  0x6e   : > { %2605 = vrot.lane.b32.xlu1 %v2579_v51, %s3212_s4  ;;  %v5042_v51 = vld [vmem:[#allocation14_spill] sm:$0xff] }
  0x6f   : > { %v511_v14 = vrot.slane %v5042_v51, 2 }
  0x70   : > { %2600 = vrot.lane.b32.xlu0 %v3606_v15, %s3217_s24 }
  0x72   : > { %2615 = vrot.lane.b32.xlu1 %v3382_v44, %s3213_s5 }
  0x74   : > { %2610 = vrot.lane.b32.xlu0 %v2609_v11, %s3212_s4 }
  0x76   : > { %2625 = vrot.lane.b32.xlu1 %v3606_v15, %s3214_s8 }
  0x78   : > { %2620 = vrot.lane.b32.xlu0 %v3432_v13, %s3213_s5 }
  0x7a   : > { %2635 = vrot.lane.b32.xlu1 %v2609_v11, %s3215_s11 }
  0x7c   : > { %2630 = vrot.lane.b32.xlu0 %v3627_v5, %s3214_s8 }
  0x7e   : > { %2645 = vrot.lane.b32.xlu1 %v3432_v13, %s3216_s20 }
  0x80   : > { %2640 = vrot.lane.b32.xlu0 %v2639_v12, %s3215_s11 }
  0x82   : > { %2655 = vrot.lane.b32.xlu1 %v3627_v5, %s3217_s24 }
  0x84   : > { %2650 = vrot.lane.b32.xlu0 %v5035_v19, %s3216_s20 }
  0x86   : > { %2665 = vrot.lane.b32.xlu1 %v2639_v12, %s3212_s4 }
  0x88   : > { %2660 = vrot.lane.b32.xlu0 %v3625_v34, %s3217_s24 }
  0x8a   : > { %2675 = vrot.lane.b32.xlu1 %v5035_v19, %s3213_s5  ;;  %v5043_v19 = vld [vmem:[#allocation12_spill] sm:$0xff] }
  0x8c   : > { %2670 = vrot.lane.b32.xlu0 %v2669_v31, %s3212_s4 }
  0x8e   : > { %2685 = vrot.lane.b32.xlu1 %v3625_v34, %s3214_s8 }
  0x90   : > { %2680 = vrot.lane.b32.xlu0 %v3477_v54, %s3213_s5 }
  0x92   : > { %2695 = vrot.lane.b32.xlu1 %v2669_v31, %s3215_s11  ;;  %v518_v31 = vrot.slane %v5043_v19, 2 }
  0x94   : > { %2690 = vrot.lane.b32.xlu0 %v3647_v20, %s3214_s8  ;;  %v3748_v24 = vpop.permute.xlu1 %2420 }
  0x96   : > { %v3752_v36 = vpop.permute.xlu0 %2410  ;;  %2705 = vrot.lane.b32.xlu1 %v3477_v54, %s3216_s20  ;;  %v2729_v54 = vpack.i.bf16 %v3428_v10, %v3425_v9 }
  0x98   : > { %2700 = vrot.lane.b32.xlu0 %v2699_v25, %s3215_s11  ;;  %v3757_v44 = vpop.permute.xlu1 %2425 }
  0x9a   : > { %v3759_v49 = vpop.permute.xlu0 %2415  ;;  %2715 = vrot.lane.b32.xlu1 %v3647_v20, %s3217_s24 }
  0x9c   : > { %2710 = vrot.lane.b32.xlu0 %v5036_v50, %s3216_s20  ;;  %v3765_v13 = vpop.permute.xlu1 %2435 }
  0x9e   : > { %v3767_v42 = vpop.permute.xlu0 %2430  ;;  %2725 = vrot.lane.b32.xlu1 %v2699_v25, %s3212_s4  ;;  %v512_v25 = vsel %vm449_vm1, %v510_v1, %v511_v14 }
  0xa0   : > { %2720 = vrot.lane.b32.xlu0 %v3645_v33, %s3217_s24  ;;  %v3772_v43 = vpop.permute.xlu1 %2445 }
  0xa2   : > { %v3776_v15 = vpop.permute.xlu0 %2440  ;;  %2735 = vrot.lane.b32.xlu1 %v5036_v50, %s3213_s5 }
  0xa4   : > { %2730 = vrot.lane.b32.xlu0 %v2729_v54, %s3212_s4  ;;  %v3781_v29 = vpop.permute.xlu1 %2455 }
  0xa6   : > { %v3783_v34 = vpop.permute.xlu0 %2450  ;;  %2745 = vrot.lane.b32.xlu1 %v3645_v33, %s3214_s8 }
  0xa8   : > { %2740 = vrot.lane.b32.xlu0 %v3519_v53, %s3213_s5  ;;  %v3789_v5 = vpop.permute.xlu1 %2465 }
  0xaa   : > { %v3791_v9 = vpop.permute.xlu0 %2460  ;;  %2755 = vrot.lane.b32.xlu1 %v2729_v54, %s3215_s11  ;;  %v5044_v54 = vld [vmem:[#allocation10_spill] sm:$0xff] }
  0xac   : > { %2750 = vrot.lane.b32.xlu0 %v3662_v60, %s3214_s8  ;;  %v3796_v10 = vpop.permute.xlu1 %2475 }
  0xae   : > { %v3800_v4 = vpop.permute.xlu0 %2470  ;;  %2765 = vrot.lane.b32.xlu1 %v3519_v53, %s3216_s20  ;;  %v2789_v53 = vpack.i.bf16 %v3464_v41, %v3461_v40  ;;  %v5038_v41 = vld [vmem:[#allocation6_spill] sm:$0xff] }
  0xb0   : > { %2760 = vrot.lane.b32.xlu0 %v2759_v32, %s3215_s11  ;;  %v3805_v26 = vpop.permute.xlu1 %2485 }
  0xb2   : > { %v3807_v30 = vpop.permute.xlu0 %2480  ;;  %2775 = vrot.lane.b32.xlu1 %v3662_v60, %s3217_s24 }
  0xb3   : > { %5037 = vst [vmem:[#allocation5_spill] sm:$0xff] %v3807_v30 }
  0xb4   : > { %2770 = vrot.lane.b32.xlu0 %v3497_v22, %s3216_s20  ;;  %v3813_v28 = vpop.permute.xlu1 %2495 }
  0xb6   : > { %v3815_v56 = vpop.permute.xlu0 %2490  ;;  %2785 = vrot.lane.b32.xlu1 %v2759_v32, %s3212_s4  ;;  %v515_v32 = vrot.slane %v5044_v54, 2 }
  0xb8   : > { %2780 = vrot.lane.b32.xlu0 %v3660_v47, %s3217_s24  ;;  %v3820_v61 = vpop.permute.xlu1 %2505 }
  0xba   : > { %v3824_v33 = vpop.permute.xlu0 %2500  ;;  %2795 = vrot.lane.b32.xlu1 %v3497_v22, %s3213_s5  ;;  %v505_v22 = vrot.slane %v5038_v41, 2 }
  0xbc   : > { %2790 = vrot.lane.b32.xlu0 %v2789_v53, %s3212_s4  ;;  %v3829_v20 = vpop.permute.xlu1 %2515  ;;  %v507_v63 = vsel %vm449_vm1, %v505_v22, %v506_v16  ;;  %v2413_v22 = vunpack.i.h.bf16 %v3752_v36  ;;  %v2418_v16 = vunpack.i.h.bf16 %v3759_v49 }
  0xbd   : > { %v3864_v55 = vpack.i.bf16 %v509_v48, %v507_v63  ;;  %v2417_v63 = vunpack.i.l.bf16 %v3759_v49  ;;  %v2493_v49 = vunpack.i.h.bf16 %v3815_v56 }
  0xbe   : > { %v3831_v37 = vpop.permute.xlu0 %2510  ;;  %2805 = vrot.lane.b32.xlu1 %v3660_v47, %s3214_s8  ;;  %v2819_v47 = vpack.i.bf16 %v5039_v38, %v5038_v41  ;;  %v2412_v38 = vunpack.i.l.bf16 %v3752_v36  ;;  %v2497_v36 = vunpack.i.l.bf16 %v3813_v28 }
  0xc0   : > { %2800 = vrot.lane.b32.xlu0 %v3546_v27, %s3213_s5  ;;  %v3837_v62 = vpop.permute.xlu1 %2525 }
  0xc2   : > { %v3839_v40 = vpop.permute.xlu0 %2520  ;;  %2815 = vrot.lane.b32.xlu1 %v2789_v53, %s3215_s11  ;;  %v5045_v53 = vld [vmem:[#allocation11_spill] sm:$0xff] }
  0xc3   : > { %v516_v41 = vrot.slane %v5045_v53, 2  ;;  %v3900_v48 = vpack.i.bf16 %v5045_v53, %v5044_v54 }
  0xc4   : > { %2810 = vrot.lane.b32.xlu0 %v3674_v46, %s3214_s8  ;;  %v3847_v35 = vpop.permute.xlu1 %2535 }
  0xc5   : > { %v519_v19 = vsel %vm449_vm1, %v516_v41, %v518_v31 }
  0xc6   : > { %v3851_v60 = vpop.permute.xlu0 %2530  ;;  %2825 = vrot.lane.b32.xlu1 %v3546_v27, %s3216_s20  ;;  %v513_v27 = vrot.slane %v3509_v45, 2 }
  0xc8   : > { %2820 = vrot.lane.b32.xlu0 %v2819_v47, %s3215_s11  ;;  %v3858_v52 = vpop.permute.xlu1 %2545  ;;  %v514_v45 = vsel %vm449_vm1, %v511_v14, %v513_v27  ;;  %v1230_v14 = vsel %vm1228_vm3, %v3311_v7, %v2413_v22  ;;  %v2492_v27 = vunpack.i.l.bf16 %v3815_v56  ;;  %v1231_v7 = vsel %vm1228_vm3, %v3331_v17, %v2417_v63 }
  0xc9   : > { %v3895_v2 = vpack.i.bf16 %v514_v45, %v512_v25  ;;  %v1229_v25 = vsel %vm1228_vm3, %v3308_v6, %v2412_v38  ;;  %v2547_v45 = vunpack.i.l.bf16 %v3858_v52  ;;  %v1263_v17 = vsel %vm1261_vm4, %v1230_v14, %v2493_v49 }
  0xca   : > { %v3860_v8 = vpop.permute.xlu0 %2540  ;;  %2835 = vrot.lane.b32.xlu1 %v3674_v46, %s3217_s24  ;;  %v3879_v46 = vpack.i.bf16 %v5042_v51, %v5041_v0  ;;  %v2498_v0 = vunpack.i.h.bf16 %v3813_v28  ;;  %v3906_v51 = vsel %vm449_vm1, %v515_v32, %v516_v41  ;;  %v1232_v28 = vsel %vm1228_vm3, %v3334_v18, %v2418_v16 }
  0xcb   : > { %v1264_v18 = vsel %vm1261_vm4, %v1231_v7, %v2497_v36  ;;  %v1262_v22 = vsel %vm1261_vm4, %v1229_v25, %v2492_v27 }
  0xcc   : > { %2830 = vrot.lane.b32.xlu0 %v3527_v3, %s3216_s20  ;;  %v3871_v11 = vpop.permute.xlu1 %2555  ;;  %v1265_v32 = vsel %vm1261_vm4, %v1232_v28, %v2498_v0 }
  0xcd   : > { %v2558_v56 = vunpack.i.h.bf16 %v3871_v11  ;;  %v2557_v31 = vunpack.i.l.bf16 %v3871_v11  ;;  %v1295_v11 = vsel %vm1294_vm5, %v1262_v22, %v2547_v45 }
  0xce   : > { %v3873_v12 = vpop.permute.xlu0 %2550  ;;  %2845 = vrot.lane.b32.xlu1 %v3864_v55, %s3211_s30 }
  0xcf   : > { %v2552_v6 = vunpack.i.l.bf16 %v3873_v12  ;;  %v2553_v0 = vunpack.i.h.bf16 %v3873_v12 }
  0xd0   : > { %2840 = vrot.lane.b32.xlu0 %v3864_v55, %s3217_s24  ;;  %v2566_v50 = vpop.permute.xlu1 %2565 }
  0xd1   : > { %v2568_v53 = vunpack.i.h.bf16 %v2566_v50  ;;  %v1297_v14 = vsel %vm1294_vm5, %v1264_v18, %v2552_v6 }
  0xd2   : > { %v3891_v21 = vpop.permute.xlu0 %2560  ;;  %2855 = vrot.lane.b32.xlu1 %v3879_v46, %s3212_s4 }
  0xd3   : > { %v2563_v27 = vunpack.i.h.bf16 %v3891_v21  ;;  %v2562_v25 = vunpack.i.l.bf16 %v3891_v21 }
  0xd4   : > { %2850 = vrot.lane.b32.xlu0 %v2819_v47, %s3212_s4  ;;  %v2576_v1 = vpop.permute.xlu1 %2575  ;;  %v2548_v47 = vunpack.i.h.bf16 %v3858_v52  ;;  %v2567_v52 = vunpack.i.l.bf16 %v2566_v50  ;;  %v1328_v50 = vsel %vm1327_vm6, %v1295_v11, %v2557_v31 }
  0xd5   : > { %v2578_v38 = vunpack.i.h.bf16 %v2576_v1  ;;  %v2577_v16 = vunpack.i.l.bf16 %v2576_v1 }
  0xd6   : > { %v2571_v54 = vpop.permute.xlu0 %2570  ;;  %2865 = vrot.lane.b32.xlu1 %v3561_v39, %s3213_s5  ;;  %v1296_v63 = vsel %vm1294_vm5, %v1263_v17, %v2548_v47  ;;  %v1361_v1 = vsel %vm1360_vm7, %v1328_v50, %v2567_v52  ;;  %v1298_v17 = vsel %vm1294_vm5, %v1265_v32, %v2553_v0 }
  0xd7   : > { %v1394_v47 = vsel %vm1393_vm8, %v1361_v1, %v2577_v16  ;;  %v2573_v31 = vunpack.i.h.bf16 %v2571_v54  ;;  %v2572_v6 = vunpack.i.l.bf16 %v2571_v54 }
  0xd8   : > { %2860 = vrot.lane.b32.xlu0 %v3527_v3, %s3213_s5  ;;  %v2586_v41 = vpop.permute.xlu1 %2585  ;;  %v1329_v3 = vsel %vm1327_vm6, %v1296_v63, %v2558_v56  ;;  %v523_v63 = vrot.slane %v3538_v58, 2  ;;  %v5047_v58 = vld [vmem:[#allocation19_spill] sm:$0xff] }
  0xd9   : > { %v2588_v30 = vunpack.i.h.bf16 %v2586_v41  ;;  %v2587_v36 = vunpack.i.l.bf16 %v2586_v41  ;;  %v1362_v49 = vsel %vm1360_vm7, %v1329_v3, %v2568_v53  ;;  %v521_v1 = vrot.slane %v5047_v58, 2 }
  0xda   : > { %v2581_v7 = vpop.permute.xlu0 %2580  ;;  %2875 = vrot.lane.b32.xlu1 %v3895_v2, %s3214_s8  ;;  %v1395_v45 = vsel %vm1393_vm8, %v1362_v49, %v2578_v38 }
  0xdb   : > { %v1427_v53 = vsel %vm1426_vm9, %v1394_v47, %v2587_v36  ;;  %v1428_v21 = vsel %vm1426_vm9, %v1395_v45, %v2588_v30  ;;  %v2583_v52 = vunpack.i.h.bf16 %v2581_v7  ;;  %v2582_v41 = vunpack.i.l.bf16 %v2581_v7 }
  0xdc   : > { %2870 = vrot.lane.b32.xlu0 %v3864_v55, %s3214_s8  ;;  %v2596_v28 = vpop.permute.xlu1 %2595  ;;  %v1330_v30 = vsel %vm1327_vm6, %v1297_v14, %v2562_v25  ;;  %v1331_v36 = vsel %vm1327_vm6, %v1298_v17, %v2563_v27  ;;  %v3963_v7 = vpack.i.bf16 %v519_v19, %v3906_v51  ;;  %v2423_v17 = vunpack.i.h.bf16 %v3748_v24 }
  0xdd   : > { %v2598_v56 = vunpack.i.h.bf16 %v2596_v28  ;;  %v2597_v12 = vunpack.i.l.bf16 %v2596_v28  ;;  %v1363_v50 = vsel %vm1360_vm7, %v1330_v30, %v2572_v6  ;;  %v1364_v32 = vsel %vm1360_vm7, %v1331_v36, %v2573_v31 }
  0xde   : > { %v2591_v18 = vpop.permute.xlu0 %2590  ;;  %2885 = vrot.lane.b32.xlu1 %v3900_v48, %s3215_s11  ;;  %v1396_v14 = vsel %vm1393_vm8, %v1363_v50, %v2582_v41  ;;  %v1397_v49 = vsel %vm1393_vm8, %v1364_v32, %v2583_v52  ;;  %v524_v6 = vsel %vm449_vm1, %v521_v1, %v523_v63  ;;  %v5050_v52 = vld [vmem:[#allocation17_spill] sm:$0xff]  ;;  %v2428_v63 = vunpack.i.h.bf16 %v3757_v44  ;;  %v4013_v50 = vld [vmem:[%s3293_s28 + $0x188] sm:$0xff] }
  0xdf   : > { %v1460_v55 = vsel %vm1459_vm10, %v1427_v53, %v2597_v12  ;;  %v1461_v22 = vsel %vm1459_vm10, %v1428_v21, %v2598_v56  ;;  %v2593_v38 = vunpack.i.h.bf16 %v2591_v18  ;;  %v2592_v16 = vunpack.i.l.bf16 %v2591_v18  ;;  %v5048_v18 = vld [vmem:[#allocation15_spill] sm:$0xff]  ;;  %v5049_v53 = vld [vmem:[#allocation16_spill] sm:$0xff] }
  0xe0   : > { %2880 = vrot.lane.b32.xlu0 %v3879_v46, %s3215_s11  ;;  %v3957_v54 = vpop.permute.xlu1 %2605  ;;  %v1492_v11 = vpack.c.bf16 %v1461_v22, %v1460_v55  ;;  %v5046_v46 = vld [vmem:[#allocation18_spill] sm:$0xff]  ;;  %v526_v21 = vrot.slane %v5049_v53, 2  ;;  %v528_v41 = vrot.slane %v5050_v52, 2  ;;  %v2954_v36 = vpack.i.bf16 %v5049_v53, %v5048_v18 }
  0xe1   : > { %v520_v0 = vrot.slane %v5046_v46, 2  ;;  %v1429_v27 = vsel %vm1426_vm9, %v1396_v14, %v2592_v16  ;;  %v1430_v25 = vsel %vm1426_vm9, %v1397_v49, %v2593_v38  ;;  %v3996_v22 = vpack.i.bf16 %v5047_v58, %v5046_v46  ;;  %v4002_v16 = vld [vmem:[%s3293_s28 + $0x180] sm:$0xff]  ;;  %v3118_v14 = vld [vmem:[%s3293_s28 + $0x38] sm:$0xff] }
  0xe2   : > { %v2601_v3 = vpop.permute.xlu0 %2600  ;;  %2895 = vrot.lane.b32.xlu1 %v3557_v59, %s3216_s20  ;;  %2320 = vmatprep.mubr.msk.bf16.mxu0 %vm1528_vm11, %v1492_v11  ;;  %v2422_v11 = vunpack.i.l.bf16 %v3748_v24  ;;  %v2427_v32 = vunpack.i.l.bf16 %v3757_v44  ;;  %v2508_v24 = vunpack.i.h.bf16 %v3820_v61  ;;  %v2507_v46 = vunpack.i.l.bf16 %v3820_v61  ;;  %v3119_v61 = vld [vmem:[%s3293_s28 + $0x30] sm:$0xff] }
  0xe3   : > { %v2603_v51 = vunpack.i.h.bf16 %v2601_v3  ;;  %v2602_v19 = vunpack.i.l.bf16 %v2601_v3  ;;  %v522_v31 = vsel %vm449_vm1, %v520_v0, %v521_v1  ;;  %v4024_v58 = vsel %vm449_vm1, %v526_v21, %v528_v41 }
  0xe4   : > { %2890 = vrot.lane.b32.xlu0 %v3561_v39, %s3216_s20  ;;  %v3978_v28 = vpop.permute.xlu1 %2615  ;;  %v525_v39 = vrot.slane %v5048_v18, 2  ;;  %v3999_v38 = vpack.i.bf16 %v524_v6, %v522_v31  ;;  %v725_v1 = vrot.slane %v4002_v16, 1  ;;  %v1234_v44 = vsel %vm1228_vm3, %v3118_v14, %v2423_v17  ;;  %v3121_v31 = vld [vmem:[%s3293_s28 + $0x48] sm:$0xff] }
  0xe5   : > { %v1462_v47 = vsel %vm1459_vm10, %v1429_v27, %v2602_v19  ;;  %v1463_v45 = vsel %vm1459_vm10, %v1430_v25, %v2603_v51  ;;  %v2503_v49 = vunpack.i.h.bf16 %v3824_v33  ;;  %v2502_v51 = vunpack.i.l.bf16 %v3824_v33 }
  0xe6   : > { %v1493_v56 = vpack.c.bf16 %v1463_v45, %v1462_v47  ;;  %v3982_v12 = vpop.permute.xlu0 %2610  ;;  %2905 = vrot.lane.b32.xlu1 %v3963_v7, %s3217_s24  ;;  %v4017_v3 = vsel %vm449_vm1, %v525_v39, %v526_v21  ;;  %v726_v19 = vrot.slane %v4013_v50, 1  ;;  %v1233_v27 = vsel %vm1228_vm3, %v3119_v61, %v2422_v11 }
  0xe7   : > { %v2608_v47 = vunpack.i.h.bf16 %v3957_v54  ;;  %v2607_v45 = vunpack.i.l.bf16 %v3957_v54  ;;  %v1235_v6 = vsel %vm1228_vm3, %v3121_v31, %v2427_v32  ;;  %v2618_v33 = vunpack.i.h.bf16 %v3978_v28 }
  0xe8   : > { %2900 = vrot.lane.b32.xlu0 %v3895_v2, %s3217_s24  ;;  %2321 = vmatmul.mubr.msk.bf16.vlgmr.msra.gmra.mrb[0].mxu0 %vm1528_vm11, %v1493_v56  ;;  %v2626_v55 = vpop.permute.xlu1 %2625  ;;  %v2617_v39 = vunpack.i.l.bf16 %v3978_v28  ;;  %v2613_v21 = vunpack.i.h.bf16 %v3982_v12  ;;  %v1268_v41 = vsel %vm1261_vm4, %v1235_v6, %v2507_v46  ;;  %v1266_v32 = vsel %vm1261_vm4, %v1233_v27, %v2502_v51 }
  0xe9   : > { %v2628_v17 = vunpack.i.h.bf16 %v2626_v55  ;;  %v2627_v11 = vunpack.i.l.bf16 %v2626_v55  ;;  %v1299_v28 = vsel %vm1294_vm5, %v1266_v32, %v2607_v45 }
  0xea   : > { %v4006_v30 = vpop.permute.xlu0 %2620  ;;  %2915 = vrot.lane.b32.xlu1 %v3963_v7, %s3211_s30  ;;  %v1332_v55 = vsel %vm1327_vm6, %v1299_v28, %v2617_v39 }
  0xeb   : > { %v2623_v51 = vunpack.i.h.bf16 %v4006_v30  ;;  %v2622_v27 = vunpack.i.l.bf16 %v4006_v30  ;;  %v220_v30 = vld [vmem:[%s3293_s28 + $0x190] sm:$0x3] }
  0xec   : > { %2910 = vrot.lane.b32.xlu0 %v3895_v2, %s3211_s30  ;;  %v2636_v0 = vpop.permute.xlu1 %2635  ;;  %v3120_v2 = vld [vmem:[%s3293_s28 + $0x50] sm:$0xff] }
  0xed   : > { %v1236_v25 = vsel %vm1228_vm3, %v3120_v2, %v2428_v63  ;;  %v1267_v63 = vsel %vm1261_vm4, %v1234_v44, %v2503_v49  ;;  %v2638_v14 = vunpack.i.h.bf16 %v2636_v0  ;;  %v2637_v61 = vunpack.i.l.bf16 %v2636_v0 }
  0xee   : > { %v2631_v56 = vpop.permute.xlu0 %2630  ;;  %2925 = vrot.lane.b32.xlu1 %v3996_v22, %s3212_s4  ;;  %v1269_v52 = vsel %vm1261_vm4, %v1236_v25, %v2508_v24  ;;  %v1300_v2 = vsel %vm1294_vm5, %v1267_v63, %v2608_v47  ;;  %v2612_v44 = vunpack.i.l.bf16 %v3982_v12  ;;  %v1365_v0 = vsel %vm1360_vm7, %v1332_v55, %v2627_v11 }
  0xef   : > { %v1302_v46 = vsel %vm1294_vm5, %v1269_v52, %v2613_v21  ;;  %v1398_v45 = vsel %vm1393_vm8, %v1365_v0, %v2637_v61  ;;  %v2633_v12 = vunpack.i.h.bf16 %v2631_v56  ;;  %v2632_v21 = vunpack.i.l.bf16 %v2631_v56 }
  0xf0   : > { %2920 = vrot.lane.b32.xlu0 %v3900_v48, %s3212_s4  ;;  %v2646_v54 = vpop.permute.xlu1 %2645  ;;  %v1333_v48 = vsel %vm1327_vm6, %v1300_v2, %v2618_v33  ;;  %v728_v55 = vrot.slane %v220_v30, 1 }
  0xf1   : > { %v2648_v31 = vunpack.i.h.bf16 %v2646_v54  ;;  %v2647_v24 = vunpack.i.l.bf16 %v2646_v54  ;;  %v1366_v49 = vsel %vm1360_vm7, %v1333_v48, %v2628_v17 }
  0xf2   : > { %v2641_v25 = vpop.permute.xlu0 %2640  ;;  %2935 = vrot.lane.b32.xlu1 %v3582_v57, %s3213_s5  ;;  %v1399_v6 = vsel %vm1393_vm8, %v1366_v49, %v2638_v14  ;;  %v1301_v14 = vsel %vm1294_vm5, %v1268_v41, %v2612_v44  ;;  %v829_v44 = vrot.slane %v220_v30, 2  ;;  %v4138_v30 = vld [vmem:[%s3293_s28 + $0x170] sm:$0xff] }
  0xf3   : > { %v1431_v52 = vsel %vm1426_vm9, %v1398_v45, %v2647_v24  ;;  %v1432_v17 = vsel %vm1426_vm9, %v1399_v6, %v2648_v31  ;;  %v2643_v54 = vunpack.i.h.bf16 %v2641_v25  ;;  %v1334_v31 = vsel %vm1327_vm6, %v1301_v14, %v2622_v27 }
  0xf4   : > { %2930 = vrot.lane.b32.xlu0 %v3557_v59, %s3213_s5  ;;  %v2656_v47 = vpop.permute.xlu1 %2655  ;;  %v2642_v59 = vunpack.i.l.bf16 %v2641_v25  ;;  %v1335_v24 = vsel %vm1327_vm6, %v1302_v46, %v2623_v51  ;;  %v826_v25 = vrot.slane %v4002_v16, 2  ;;  %v1367_v48 = vsel %vm1360_vm7, %v1334_v31, %v2632_v21 }
  0xf5   : > { %v2658_v33 = vunpack.i.h.bf16 %v2656_v47  ;;  %v2657_v39 = vunpack.i.l.bf16 %v2656_v47  ;;  %v1368_v0 = vsel %vm1360_vm7, %v1335_v24, %v2633_v12  ;;  %v729_v12 = vsel %vm272_vm0, %v726_v19, %v728_v55 }
  0xf6   : > { %v2651_v11 = vpop.permute.xlu0 %2650  ;;  %2945 = vrot.lane.b32.xlu1 %v3999_v38, %s3214_s8  ;;  %v1400_v46 = vsel %vm1393_vm8, %v1367_v48, %v2642_v59  ;;  %v1401_v49 = vsel %vm1393_vm8, %v1368_v0, %v2643_v54  ;;  %v4145_v59 = vld [vmem:[%s3293_s28 + $0x1a8] sm:$0x3]  ;;  %v2513_v48 = vunpack.i.h.bf16 %v3831_v37  ;;  %v2512_v0 = vunpack.i.l.bf16 %v3831_v37 }
  0xf7   : > { %v1464_v63 = vsel %vm1459_vm10, %v1431_v52, %v2657_v39  ;;  %v1465_v32 = vsel %vm1459_vm10, %v1432_v17, %v2658_v33  ;;  %v2653_v28 = vunpack.i.h.bf16 %v2651_v11  ;;  %v2652_v56 = vunpack.i.l.bf16 %v2651_v11  ;;  %v4127_v17 = vld [vmem:[%s3293_s28 + $0x1a0] sm:$0xff]  ;;  %v4135_v11 = vld [vmem:[%s3293_s28 + $0x168] sm:$0xff] }
  0xf8   : > { %v1494_v61 = vpack.c.bf16 %v1465_v32, %v1464_v63  ;;  %2940 = vrot.lane.b32.xlu0 %v3963_v7, %s3214_s8  ;;  %v4077_v2 = vpop.permute.xlu1 %2665  ;;  %v827_v7 = vrot.slane %v4013_v50, 2  ;;  %v4106_v39 = vpack.i.bf16 %v4024_v58, %v4017_v3  ;;  %v4124_v58 = vld [vmem:[%s3293_s28 + $0x198] sm:$0xff]  ;;  %v2437_v63 = vunpack.i.l.bf16 %v3765_v13 }
  0xf9   : > { %v1433_v47 = vsel %vm1426_vm9, %v1400_v46, %v2652_v56  ;;  %v1434_v45 = vsel %vm1426_vm9, %v1401_v49, %v2653_v28  ;;  %v2433_v32 = vunpack.i.h.bf16 %v3767_v42  ;;  %v3024_v28 = vpack.i.bf16 %v4127_v17, %v4124_v58 }
  0xfa   : > { %v2661_v41 = vpop.permute.xlu0 %2660  ;;  %2955 = vrot.lane.b32.xlu1 %v2954_v36, %s3215_s11  ;;  %2324 = vmatprep.mubr.msk.bf16.mxu0 %vm1528_vm11, %v1494_v61  ;;  %v828_v21 = vsel %vm449_vm1, %v826_v25, %v827_v7  ;;  %v830_v52 = vsel %vm449_vm1, %v827_v7, %v829_v44  ;;  %v1027_v61 = vrot.slane %v4127_v17, 1  ;;  %v2517_v56 = vunpack.i.l.bf16 %v3829_v20  ;;  %v3125_v7 = vld [vmem:[%s3293_s28 + $0x78] sm:$0xff]  ;;  %v3126_v44 = vld [vmem:[%s3293_s28 + $0x68] sm:$0xff] }
  0xfb   : > { %v2663_v51 = vunpack.i.h.bf16 %v2661_v41  ;;  %v2662_v27 = vunpack.i.l.bf16 %v2661_v41  ;;  %v1026_v24 = vrot.slane %v4124_v58, 1  ;;  %v1029_v55 = vrot.slane %v4145_v59, 1 }
  0xfc   : > { %2950 = vrot.lane.b32.xlu0 %v3996_v22, %s3215_s11  ;;  %v4096_v18 = vpop.permute.xlu1 %2675  ;;  %v727_v22 = vsel %vm272_vm0, %v725_v1, %v726_v19  ;;  %v2438_v1 = vunpack.i.h.bf16 %v3765_v13  ;;  %v4132_v19 = vpack.i.bf16 %v4013_v50, %v4002_v16  ;;  %v4153_v16 = vpack.i.bf16 %v830_v52, %v828_v21 }
  0xfd   : > { %v1466_v53 = vsel %vm1459_vm10, %v1433_v47, %v2662_v27  ;;  %v1467_v36 = vsel %vm1459_vm10, %v1434_v45, %v2663_v51  ;;  %v4142_v54 = vpack.i.bf16 %v729_v12, %v727_v22  ;;  %v2432_v50 = vunpack.i.l.bf16 %v3767_v42  ;;  %v3124_v42 = vld [vmem:[%s3293_s28 + $0x80] sm:$0xff] }
  0xfe   : > { %v1495_v6 = vpack.c.bf16 %v1467_v36, %v1466_v53  ;;  %v4100_v33 = vpop.permute.xlu0 %2670  ;;  %2965 = vrot.lane.b32.xlu1 %v3580_v23, %s3216_s20  ;;  %v2518_v13 = vunpack.i.h.bf16 %v3829_v20  ;;  %v1240_v25 = vsel %vm1228_vm3, %v3124_v42, %v2438_v1  ;;  %v1128_v41 = vrot.slane %v4127_v17, 2  ;;  %v3127_v47 = vld [vmem:[%s3293_s28 + $0x60] sm:$0xff] }
  0xff   : > { %v1239_v20 = vsel %vm1228_vm3, %v3125_v7, %v2437_v63  ;;  %v1238_v46 = vsel %vm1228_vm3, %v3126_v44, %v2433_v32  ;;  %v2668_v49 = vunpack.i.h.bf16 %v4077_v2  ;;  %v2667_v51 = vunpack.i.l.bf16 %v4077_v2 }
 0x100   : > { %2960 = vrot.lane.b32.xlu0 %v3582_v57, %s3216_s20  ;;  %2325 = vmatmul.mubr.msk.bf16.gmra.mrb[4].mxu0 %vm1528_vm11, %v1495_v6  ;;  %v4121_v3 = vpop.permute.xlu1 %2685  ;;  %v2989_v57 = vpack.i.bf16 %v4138_v30, %v4135_v11  ;;  %v1237_v45 = vsel %vm1228_vm3, %v3127_v47, %v2432_v50  ;;  %v2678_v37 = vunpack.i.h.bf16 %v4096_v18  ;;  %v2677_v53 = vunpack.i.l.bf16 %v4096_v18 }
 0x101   : > { %v2673_v36 = vunpack.i.h.bf16 %v4100_v33  ;;  %v1273_v6 = vsel %vm1261_vm4, %v1240_v25, %v2518_v13  ;;  %v1272_v22 = vsel %vm1261_vm4, %v1239_v20, %v2517_v56  ;;  %v2688_v12 = vunpack.i.h.bf16 %v4121_v3 }
 0x102   : > { %v4149_v14 = vpop.permute.xlu0 %2680  ;;  %2975 = vrot.lane.b32.xlu1 %v4106_v39, %s3217_s24  ;;  %v2687_v2 = vunpack.i.l.bf16 %v4121_v3  ;;  %v1270_v52 = vsel %vm1261_vm4, %v1237_v45, %v2512_v0  ;;  %v1271_v1 = vsel %vm1261_vm4, %v1238_v46, %v2513_v48  ;;  %v2672_v48 = vunpack.i.l.bf16 %v4100_v33 }
 0x103   : > { %v1303_v32 = vsel %vm1294_vm5, %v1270_v52, %v2667_v51  ;;  %v1304_v50 = vsel %vm1294_vm5, %v1271_v1, %v2668_v49  ;;  %v1306_v25 = vsel %vm1294_vm5, %v1273_v6, %v2673_v36  ;;  %v2683_v7 = vunpack.i.h.bf16 %v4149_v14 }
 0x104   : > { %2970 = vrot.lane.b32.xlu0 %v3999_v38, %s3217_s24  ;;  %v2696_v31 = vpop.permute.xlu1 %2695  ;;  %v1336_v3 = vsel %vm1327_vm6, %v1303_v32, %v2677_v53  ;;  %v2682_v20 = vunpack.i.l.bf16 %v4149_v14  ;;  %v1127_v32 = vrot.slane %v4124_v58, 2  ;;  %v2448_v58 = vunpack.i.h.bf16 %v3772_v43 }
 0x105   : > { %v2698_v63 = vunpack.i.h.bf16 %v2696_v31  ;;  %v2697_v18 = vunpack.i.l.bf16 %v2696_v31  ;;  %v1369_v31 = vsel %vm1360_vm7, %v1336_v3, %v2687_v2  ;;  %v1305_v2 = vsel %vm1294_vm5, %v1272_v22, %v2672_v48 }
 0x106   : > { %v2691_v27 = vpop.permute.xlu0 %2690  ;;  %2985 = vrot.lane.b32.xlu1 %v4106_v39, %s3211_s30  ;;  %v1028_v22 = vsel %vm272_vm0, %v1026_v24, %v1027_v61 }
 0x107   : > { %v1402_v46 = vsel %vm1393_vm8, %v1369_v31, %v2697_v18  ;;  %v2693_v45 = vunpack.i.h.bf16 %v2691_v27  ;;  %v1339_v18 = vsel %vm1327_vm6, %v1306_v25, %v2683_v7 }
 0x108   : > { %2980 = vrot.lane.b32.xlu0 %v3999_v38, %s3211_s30  ;;  %v2706_v21 = vpop.permute.xlu1 %2705  ;;  %v1337_v38 = vsel %vm1327_vm6, %v1304_v50, %v2678_v37  ;;  %v2692_v37 = vunpack.i.l.bf16 %v2691_v27 }
 0x109   : > { %v2708_v13 = vunpack.i.h.bf16 %v2706_v21  ;;  %v2707_v56 = vunpack.i.l.bf16 %v2706_v21  ;;  %v1370_v0 = vsel %vm1360_vm7, %v1337_v38, %v2688_v12 }
 0x10a   : > { %v2701_v42 = vpop.permute.xlu0 %2700  ;;  %2995 = vrot.lane.b32.xlu1 %v4132_v19, %s3212_s4  ;;  %v1403_v49 = vsel %vm1393_vm8, %v1370_v0, %v2698_v63  ;;  %v1338_v63 = vsel %vm1327_vm6, %v1305_v2, %v2682_v20 }
 0x10b   : > { %v1435_v33 = vsel %vm1426_vm9, %v1402_v46, %v2707_v56  ;;  %v1436_v53 = vsel %vm1426_vm9, %v1403_v49, %v2708_v13  ;;  %v2703_v14 = vunpack.i.h.bf16 %v2701_v42  ;;  %v2702_v6 = vunpack.i.l.bf16 %v2701_v42 }
 0x10c   : > { %2990 = vrot.lane.b32.xlu0 %v2989_v57, %s3212_s4  ;;  %v2716_v44 = vpop.permute.xlu1 %2715  ;;  %v1371_v50 = vsel %vm1360_vm7, %v1338_v63, %v2692_v37  ;;  %v1372_v13 = vsel %vm1360_vm7, %v1339_v18, %v2693_v45  ;;  %v1130_v42 = vrot.slane %v4145_v59, 2  ;;  %v2443_v49 = vunpack.i.h.bf16 %v3776_v15  ;;  %s2236_s4 = sshll.u32 %s161_s29, 8 }
 0x10d   : > { %v2718_v51 = vunpack.i.h.bf16 %v2716_v44  ;;  %v2717_v47 = vunpack.i.l.bf16 %v2716_v44  ;;  %v1404_v24 = vsel %vm1393_vm8, %v1371_v50, %v2702_v6  ;;  %v1405_v3 = vsel %vm1393_vm8, %v1372_v13, %v2703_v14 }
 0x10e   : > { %v2711_v36 = vpop.permute.xlu0 %2710  ;;  %3005 = vrot.lane.b32.xlu1 %v4142_v54, %s3213_s5  ;;  %v1129_v44 = vsel %vm449_vm1, %v1127_v32, %v1128_v41 }
 0x10f   : > { %v1468_v57 = vsel %vm1459_vm10, %v1435_v33, %v2717_v47  ;;  %v1469_v12 = vsel %vm1459_vm10, %v1436_v53, %v2718_v51  ;;  %v2713_v52 = vunpack.i.h.bf16 %v2711_v36  ;;  %v2712_v1 = vunpack.i.l.bf16 %v2711_v36  ;;  %v3129_v36 = vld [vmem:[%s3293_s28 + $0xa8] sm:$0xff] }
 0x110   : > { %v1496_v21 = vpack.c.bf16 %v1469_v12, %v1468_v57  ;;  %3000 = vrot.lane.b32.xlu0 %v3580_v23, %s3213_s5  ;;  %v4215_v27 = vpop.permute.xlu1 %2725  ;;  %v1030_v23 = vsel %vm272_vm0, %v1027_v61, %v1029_v55  ;;  %v2527_v47 = vunpack.i.l.bf16 %v3837_v62  ;;  %v2523_v33 = vunpack.i.h.bf16 %v3839_v40  ;;  %s4758_s5 = scalar_lea.vmem [#allocation2], %s2236_s4 }
 0x111   : > { %v1437_v48 = vsel %vm1426_vm9, %v1404_v24, %v2712_v1  ;;  %v1438_v31 = vsel %vm1426_vm9, %v1405_v3, %v2713_v52  ;;  %v3034_v20 = vpack.i.bf16 %v1030_v23, %v1028_v22  ;;  %v2522_v53 = vunpack.i.l.bf16 %v3839_v40  ;;  %s2170_s7 = sshll.u32 %s4758_s5, 4  ;;  %s4937_s7 = int_to_ptr.vmem [resolvable:$true] %s2170_s7 }
 0x112   : > { %v2721_v56 = vpop.permute.xlu0 %2720  ;;  %3015 = vrot.lane.b32.xlu1 %v4153_v16, %s3214_s8  ;;  %2328 = vmatprep.mubr.msk.bf16.mxu0 %vm1528_vm11, %v1496_v21  ;;  %v2728_v57 = vunpack.i.h.bf16 %v4215_v27  ;;  %p3153_p0 = scmp.lt.s32.totalorder %s4937_s7, %s3151_s19 }
 0x113   : > { %v2723_v38 = vunpack.i.h.bf16 %v2721_v56  ;;  %v2722_v25 = vunpack.i.l.bf16 %v2721_v56 }
 0x114   : > { %3010 = vrot.lane.b32.xlu0 %v4106_v39, %s3214_s8  ;;  %v2736_v0 = vpop.permute.xlu1 %2735  ;;  %v1131_v39 = vsel %vm449_vm1, %v1128_v41, %v1130_v42  ;;  %v2442_v41 = vunpack.i.l.bf16 %v3776_v15  ;;  %v3130_v15 = vld [vmem:[%s3293_s28 + $0x98] sm:$0xff] }
 0x115   : > { %v1470_v7 = vsel %vm1459_vm10, %v1437_v48, %v2722_v25  ;;  %v1471_v61 = vsel %vm1459_vm10, %v1438_v31, %v2723_v38  ;;  %v3044_v17 = vpack.i.bf16 %v1131_v39, %v1129_v44  ;;  %v1242_v6 = vsel %vm1228_vm3, %v3130_v15, %v2443_v49 }
 0x116   : > { %v1497_v55 = vpack.c.bf16 %v1471_v61, %v1470_v7  ;;  %v4244_v59 = vpop.permute.xlu0 %2730  ;;  %3025 = vrot.lane.b32.xlu1 %v3024_v28, %s3215_s11  ;;  %v2447_v28 = vunpack.i.l.bf16 %v3772_v43  ;;  %v3128_v43 = vld [vmem:[%s3293_s28 + $0xb0] sm:$0xff]  ;;  %v2738_v21 = vunpack.i.h.bf16 %v2736_v0  ;;  %v2737_v52 = vunpack.i.l.bf16 %v2736_v0 }
 0x117   : > { %v1244_v37 = vsel %vm1228_vm3, %v3128_v43, %v2448_v58  ;;  %v2733_v40 = vunpack.i.h.bf16 %v4244_v59  ;;  %v1275_v50 = vsel %vm1261_vm4, %v1242_v6, %v2523_v33  ;;  %v2732_v31 = vunpack.i.l.bf16 %v4244_v59 }
 0x118   : > { %3020 = vrot.lane.b32.xlu0 %v4132_v19, %s3215_s11  ;;  %2329 = vmatmul.mubr.msk.bf16.gmra.mrb[8].mxu0 %vm1528_vm11, %v1497_v55  ;;  %v2746_v46 = vpop.permute.xlu1 %2745  ;;  %v2528_v19 = vunpack.i.h.bf16 %v3837_v62  ;;  %v1243_v14 = vsel %vm1228_vm3, %v3129_v36, %v2447_v28  ;;  %v2727_v62 = vunpack.i.l.bf16 %v4215_v27  ;;  %v1308_v42 = vsel %vm1294_vm5, %v1275_v50, %v2728_v57  ;;  %s3146_s11 = scalar_lea.vmem %s4937_s7, 4096 }
 0x119   : > { %v1276_v63 = vsel %vm1261_vm4, %v1243_v14, %v2527_v47  ;;  %v2748_v18 = vunpack.i.h.bf16 %v2746_v46  ;;  %v2747_v32 = vunpack.i.l.bf16 %v2746_v46  ;;  %v1341_v48 = vsel %vm1327_vm6, %v1308_v42, %v2738_v21  ;;  %p3147_p11 = scmp.ne.s32.totalorder %s4937_s7, %s3146_s11 }
 0x11a   : > { %v4262_v51 = vpop.permute.xlu0 %2740  ;;  %3035 = vrot.lane.b32.xlu1 %v3034_v20, %s3216_s20  ;;  %v1277_v1 = vsel %vm1261_vm4, %v1244_v37, %v2528_v19  ;;  %v1309_v43 = vsel %vm1294_vm5, %v1276_v63, %v2732_v31  ;;  %v2458_v50 = vunpack.i.h.bf16 %v3781_v29  ;;  %v2452_v42 = vunpack.i.l.bf16 %v3783_v34 }
 0x11b   : > { %v1374_v7 = vsel %vm1360_vm7, %v1341_v48, %v2748_v18  ;;  %v2743_v61 = vunpack.i.h.bf16 %v4262_v51  ;;  %v2742_v55 = vunpack.i.l.bf16 %v4262_v51  ;;  %v2532_v31 = vunpack.i.l.bf16 %v3851_v60  ;;  %p3148_p12 = pnand %p3147_p11, %p3278_p5 }
 0x11c   : > { %3030 = vrot.lane.b32.xlu0 %v4142_v54, %s3216_s20  ;;  %v2756_v45 = vpop.permute.xlu1 %2755  ;;  %v3131_v54 = vld [vmem:[%s3293_s28 + $0x90] sm:$0xff]  ;;  %s3152_s20 = scalar_lea.vmem %s3151_s19, 8192 }
 0x11d   : > { %v1241_v2 = vsel %vm1228_vm3, %v3131_v54, %v2442_v41  ;;  %v2758_v13 = vunpack.i.h.bf16 %v2756_v45  ;;  %v2757_v56 = vunpack.i.l.bf16 %v2756_v45  ;;  %v1342_v14 = vsel %vm1327_vm6, %v1309_v43, %v2742_v55  ;;  %p3149_p13 = pneg %p3148_p12  ;;  %p3154_p1 = scmp.lt.s32.totalorder %s3152_s20, %s3146_s11 }
 0x11e   : > { %v2751_v12 = vpop.permute.xlu0 %2750  ;;  %3045 = vrot.lane.b32.xlu1 %v3044_v17, %s3217_s24  ;;  %v1274_v22 = vsel %vm1261_vm4, %v1241_v2, %v2522_v53 }
 0x11f   : > { %v1307_v23 = vsel %vm1294_vm5, %v1274_v22, %v2727_v62  ;;  %v1407_v39 = vsel %vm1393_vm8, %v1374_v7, %v2758_v13  ;;  %v2753_v28 = vunpack.i.h.bf16 %v2751_v12  ;;  %v2752_v49 = vunpack.i.l.bf16 %v2751_v12  ;;  %v3134_v7 = vld [vmem:[%s3293_s28 + $0xc8] sm:$0xff]  ;;  %p3155_p2 = por %p3154_p1, %p3153_p0 }
 0x120   : > { %3040 = vrot.lane.b32.xlu0 %v4153_v16, %s3217_s24  ;;  %v2766_v27 = vpop.permute.xlu1 %2765  ;;  %v1340_v25 = vsel %vm1327_vm6, %v1307_v23, %v2737_v52  ;;  %v1310_v16 = vsel %vm1294_vm5, %v1277_v1, %v2733_v40  ;;  %v2457_v13 = vunpack.i.l.bf16 %v3781_v29  ;;  %v3133_v29 = vld [vmem:[%s3293_s28 + $0xd8] sm:$0xff] }
 0x121   : > { %v2768_v24 = vunpack.i.h.bf16 %v2766_v27  ;;  %v2767_v3 = vunpack.i.l.bf16 %v2766_v27  ;;  %v1373_v0 = vsel %vm1360_vm7, %v1340_v25, %v2747_v32  ;;  %v1343_v15 = vsel %vm1327_vm6, %v1310_v16, %v2743_v61  ;;  %v3132_v25 = vld [vmem:[%s3293_s28 + $0xe0] sm:$0xff]  ;;  %p3156_p3 = pnand %p3155_p2, %p3149_p13 }
 0x122   : > { %v2761_v38 = vpop.permute.xlu0 %2760  ;;  %v1406_v44 = vsel %vm1393_vm8, %v1373_v0, %v2757_v56  ;;  %v1375_v6 = vsel %vm1360_vm7, %v1342_v14, %v2752_v49  ;;  %v1376_v57 = vsel %vm1360_vm7, %v1343_v15, %v2753_v28  ;;  %v2453_v56 = vunpack.i.h.bf16 %v3783_v34 }
 0x123   : > { %v1439_v17 = vsel %vm1426_vm9, %v1406_v44, %v2767_v3  ;;  %v1440_v59 = vsel %vm1426_vm9, %v1407_v39, %v2768_v24  ;;  %v2763_v19 = vunpack.i.h.bf16 %v2761_v38  ;;  %v2762_v47 = vunpack.i.l.bf16 %v2761_v38  ;;  %v3135_v44 = vld [vmem:[%s3293_s28 + $0xc0] sm:$0xff] }
 0x124   : > { %v2776_v20 = vpop.permute.xlu1 %2775  ;;  %v2538_v24 = vunpack.i.h.bf16 %v3847_v35  ;;  %v2537_v3 = vunpack.i.l.bf16 %v3847_v35  ;;  %v1248_v48 = vsel %vm1228_vm3, %v3132_v25, %v2458_v50  ;;  %v2533_v16 = vunpack.i.h.bf16 %v3851_v60 }
 0x125   : > { %v2778_v46 = vunpack.i.h.bf16 %v2776_v20  ;;  %v2777_v58 = vunpack.i.l.bf16 %v2776_v20  ;;  %v1408_v12 = vsel %vm1393_vm8, %v1375_v6, %v2762_v47  ;;  %v1409_v54 = vsel %vm1393_vm8, %v1376_v57, %v2763_v19 }
 0x126   : > { %v2771_v41 = vpop.permute.xlu0 %2770  ;;  %v1247_v0 = vsel %vm1228_vm3, %v3133_v29, %v2457_v13  ;;  %v1246_v61 = vsel %vm1228_vm3, %v3134_v7, %v2453_v56  ;;  %v1245_v35 = vsel %vm1228_vm3, %v3135_v44, %v2452_v42  ;;  %v1281_v28 = vsel %vm1261_vm4, %v1248_v48, %v2538_v24 }
 0x127   : > { %v1472_v45 = vsel %vm1459_vm10, %v1439_v17, %v2777_v58  ;;  %v1473_v51 = vsel %vm1459_vm10, %v1440_v59, %v2778_v46  ;;  %v2773_v33 = vunpack.i.h.bf16 %v2771_v41  ;;  %v2772_v53 = vunpack.i.l.bf16 %v2771_v41 }
 0x128   : > { %v1498_v37 = vpack.c.bf16 %v1473_v51, %v1472_v45  ;;  %v2786_v36 = vpop.permute.xlu1 %2785  ;;  %v1280_v60 = vsel %vm1261_vm4, %v1247_v0, %v2537_v3  ;;  %v1278_v41 = vsel %vm1261_vm4, %v1245_v35, %v2532_v31  ;;  %v1279_v19 = vsel %vm1261_vm4, %v1246_v61, %v2533_v16 }
 0x129   : > { %v1441_v52 = vsel %vm1426_vm9, %v1408_v12, %v2772_v53  ;;  %v1442_v40 = vsel %vm1426_vm9, %v1409_v54, %v2773_v33  ;;  %v2788_v55 = vunpack.i.h.bf16 %v2786_v36  ;;  %v2787_v34 = vunpack.i.l.bf16 %v2786_v36 }
 0x12a   : > { %v2781_v62 = vpop.permute.xlu0 %2780  ;;  %2332 = vmatprep.mubr.msk.bf16.mxu0 %vm1528_vm11, %v1498_v37 }
 0x12b   : > { %v2783_v2 = vunpack.i.h.bf16 %v2781_v62  ;;  %v2782_v21 = vunpack.i.l.bf16 %v2781_v62  ;;  %v1311_v51 = vsel %vm1294_vm5, %v1278_v41, %v2787_v34  ;;  %v1312_v43 = vsel %vm1294_vm5, %v1279_v19, %v2788_v55 }
 0x12c   : > { %v2796_v1 = vpop.permute.xlu1 %2795  ;;  %v2463_v41 = vunpack.i.h.bf16 %v3791_v9  ;;  %v2462_v19 = vunpack.i.l.bf16 %v3791_v9  ;;  %v3139_v9 = vld [vmem:[%s3293_s28 + $0xf0] sm:$0xff] }
 0x12d   : > { %v1474_v63 = vsel %vm1459_vm10, %v1441_v52, %v2782_v21  ;;  %v1475_v18 = vsel %vm1459_vm10, %v1442_v40, %v2783_v2  ;;  %v2798_v39 = vunpack.i.h.bf16 %v2796_v1  ;;  %v2797_v46 = vunpack.i.l.bf16 %v2796_v1 }
 0x12e   : > { %v1499_v32 = vpack.c.bf16 %v1475_v18, %v1474_v63  ;;  %v4318_v27 = vpop.permute.xlu0 %2790 }
 0x12f   : > { %v2793_v58 = vunpack.i.h.bf16 %v4318_v27  ;;  %v1344_v36 = vsel %vm1327_vm6, %v1311_v51, %v2797_v46  ;;  %v1345_v14 = vsel %vm1327_vm6, %v1312_v43, %v2798_v39  ;;  %v2792_v6 = vunpack.i.l.bf16 %v4318_v27 }
 0x130   : > { %2333 = vmatmul.mubr.msk.bf16.gmra.mrb[12].mxu0 %vm1528_vm11, %v1499_v32  ;;  %v2806_v22 = vpop.permute.xlu1 %2805  ;;  %v2543_v43 = vunpack.i.h.bf16 %v3860_v8 }
 0x131   : > { %v2808_v49 = vunpack.i.h.bf16 %v2806_v22  ;;  %v2807_v17 = vunpack.i.l.bf16 %v2806_v22  ;;  %v1314_v15 = vsel %vm1294_vm5, %v1281_v28, %v2793_v58  ;;  %v1313_v42 = vsel %vm1294_vm5, %v1280_v60, %v2792_v6  ;;  %v3137_v6 = vld [vmem:[%s3293_s28 + $0x108] sm:$0xff] }
 0x132   : > { %v4324_v23 = vpop.permute.xlu0 %2800 }
 0x133   : > { %v1377_v57 = vsel %vm1360_vm7, %v1344_v36, %v2807_v17  ;;  %v1378_v62 = vsel %vm1360_vm7, %v1345_v14, %v2808_v49  ;;  %v2803_v12 = vunpack.i.h.bf16 %v4324_v23  ;;  %v2802_v54 = vunpack.i.l.bf16 %v4324_v23  ;;  %v3136_v14 = vld [vmem:[%s3293_s28 + $0x110] sm:$0xff] }
 0x134   : > { %v2816_v38 = vpop.permute.xlu1 %2815  ;;  %v2468_v17 = vunpack.i.h.bf16 %v3789_v5 }
 0x135   : > { %v2818_v47 = vunpack.i.h.bf16 %v2816_v38  ;;  %v2817_v45 = vunpack.i.l.bf16 %v2816_v38  ;;  %v1346_v48 = vsel %vm1327_vm6, %v1313_v42, %v2802_v54  ;;  %v1347_v16 = vsel %vm1327_vm6, %v1314_v15, %v2803_v12 }
 0x136   : > { %v2811_v20 = vpop.permute.xlu0 %2810  ;;  %v1252_v15 = vsel %vm1228_vm3, %v3136_v14, %v2468_v17  ;;  %v1249_v12 = vsel %vm1228_vm3, %v3139_v9, %v2462_v19 }
 0x137   : > { %v1410_v21 = vsel %vm1393_vm8, %v1377_v57, %v2817_v45  ;;  %v1411_v52 = vsel %vm1393_vm8, %v1378_v62, %v2818_v47  ;;  %v2813_v63 = vunpack.i.h.bf16 %v2811_v20  ;;  %v2812_v18 = vunpack.i.l.bf16 %v2811_v20  ;;  %v3138_v57 = vld [vmem:[%s3293_s28 + $0xf8] sm:$0xff] }
 0x138   : > { %v2826_v59 = vpop.permute.xlu1 %2825  ;;  %v1250_v62 = vsel %vm1228_vm3, %v3138_v57, %v2463_v41 }
 0x139   : > { %v2828_v37 = vunpack.i.h.bf16 %v2826_v59  ;;  %v2827_v33 = vunpack.i.l.bf16 %v2826_v59  ;;  %v1379_v31 = vsel %vm1360_vm7, %v1346_v48, %v2812_v18  ;;  %v1380_v29 = vsel %vm1360_vm7, %v1347_v16, %v2813_v63 }
 0x13a   : > { %v2821_v53 = vpop.permute.xlu0 %2820  ;;  %v2467_v59 = vunpack.i.l.bf16 %v3789_v5  ;;  %v1283_v18 = vsel %vm1261_vm4, %v1250_v62, %v2543_v43 }
 0x13b   : > { %v1443_v27 = vsel %vm1426_vm9, %v1410_v21, %v2827_v33  ;;  %v1444_v22 = vsel %vm1426_vm9, %v1411_v52, %v2828_v37  ;;  %v2823_v50 = vunpack.i.h.bf16 %v2821_v53  ;;  %v2822_v13 = vunpack.i.l.bf16 %v2821_v53 }
 0x13c   : > { %v2836_v2 = vpop.permute.xlu1 %2835  ;;  %v2542_v37 = vunpack.i.l.bf16 %v3860_v8  ;;  %v1251_v5 = vsel %vm1228_vm3, %v3137_v6, %v2467_v59 }
 0x13d   : > { %v2838_v40 = vunpack.i.h.bf16 %v2836_v2  ;;  %v2837_v1 = vunpack.i.l.bf16 %v2836_v2  ;;  %v1412_v7 = vsel %vm1393_vm8, %v1379_v31, %v2822_v13  ;;  %v1413_v61 = vsel %vm1393_vm8, %v1380_v29, %v2823_v50 }
 0x13e   : > { %v2831_v32 = vpop.permute.xlu0 %2830  ;;  %v1282_v63 = vsel %vm1261_vm4, %v1249_v12, %v2542_v37 }
 0x13f   : > { %v1476_v56 = vsel %vm1459_vm10, %v1443_v27, %v2837_v1  ;;  %v1477_v23 = vsel %vm1459_vm10, %v1444_v22, %v2838_v40  ;;  %v2833_v24 = vunpack.i.h.bf16 %v2831_v32  ;;  %v2832_v3 = vunpack.i.l.bf16 %v2831_v32 }
 0x140   : > { %v2846_v38 = vpop.permute.xlu1 %2845  ;;  %v1500_v25 = vpack.c.bf16 %v1477_v23, %v1476_v56 }
 0x141   : > { %v1445_v20 = vsel %vm1426_vm9, %v1412_v7, %v2832_v3  ;;  %v1446_v44 = vsel %vm1426_vm9, %v1413_v61, %v2833_v24  ;;  %v2848_v45 = vunpack.i.h.bf16 %v2846_v38  ;;  %v2847_v51 = vunpack.i.l.bf16 %v2846_v38 }
 0x142   : > { %v2841_v0 = vpop.permute.xlu0 %2840  ;;  %2336 = vmatprep.mubr.msk.bf16.mxu1 %vm1528_vm11, %v1500_v25 }
 0x143   : > { %v2843_v55 = vunpack.i.h.bf16 %v2841_v0  ;;  %v2842_v34 = vunpack.i.l.bf16 %v2841_v0  ;;  %v1285_v8 = vsel %vm1261_vm4, %v1252_v15, %v2848_v45  ;;  %v1284_v52 = vsel %vm1261_vm4, %v1251_v5, %v2847_v51 }
 0x144   : > { %v2856_v35 = vpop.permute.xlu1 %2855 }
 0x145   : > { %v1478_v39 = vsel %vm1459_vm10, %v1445_v20, %v2842_v34  ;;  %v1479_v46 = vsel %vm1459_vm10, %v1446_v44, %v2843_v55  ;;  %v2858_v33 = vunpack.i.h.bf16 %v2856_v35  ;;  %v2857_v53 = vunpack.i.l.bf16 %v2856_v35 }
 0x146   : > { %v1501_v58 = vpack.c.bf16 %v1479_v46, %v1478_v39  ;;  %v2851_v28 = vpop.permute.xlu0 %2850 }
 0x147   : > { %v2853_v54 = vunpack.i.h.bf16 %v2851_v28  ;;  %v2852_v2 = vunpack.i.l.bf16 %v2851_v28  ;;  %v1317_v32 = vsel %vm1294_vm5, %v1284_v52, %v2857_v53  ;;  %v1318_v27 = vsel %vm1294_vm5, %v1285_v8, %v2858_v33 }
 0x148   : > { %2337 = vmatmul.mubr.msk.bf16.vlgmr.msra.gmra.mrb[0].mxu1 %vm1528_vm11, %v1501_v58  ;;  %v2866_v60 = vpop.permute.xlu1 %2865 }
 0x149   : > { %v2868_v40 = vunpack.i.h.bf16 %v2866_v60  ;;  %v2867_v1 = vunpack.i.l.bf16 %v2866_v60  ;;  %v1315_v42 = vsel %vm1294_vm5, %v1282_v63, %v2852_v2  ;;  %v1316_v24 = vsel %vm1294_vm5, %v1283_v18, %v2853_v54 }
 0x14a   : > { %v2861_v49 = vpop.permute.xlu0 %2860  ;;  %v2473_v63 = vunpack.i.h.bf16 %v3800_v4  ;;  %v2472_v18 = vunpack.i.l.bf16 %v3800_v4 }
 0x14b   : > { %v2863_v50 = vunpack.i.h.bf16 %v2861_v49  ;;  %v2862_v13 = vunpack.i.l.bf16 %v2861_v49  ;;  %v1350_v48 = vsel %vm1327_vm6, %v1317_v32, %v2867_v1  ;;  %v1351_v16 = vsel %vm1327_vm6, %v1318_v27, %v2868_v40 }
 0x14c   : > { %v2876_v47 = vpop.permute.xlu1 %2875  ;;  %v2478_v40 = vunpack.i.h.bf16 %v3796_v10  ;;  %v2477_v1 = vunpack.i.l.bf16 %v3796_v10  ;;  %v3142_v10 = vld [vmem:[%s3293_s28 + $0x128] sm:$0xff] }
 0x14d   : > { %v2878_v56 = vunpack.i.h.bf16 %v2876_v47  ;;  %v2877_v23 = vunpack.i.l.bf16 %v2876_v47  ;;  %v1348_v20 = vsel %vm1327_vm6, %v1315_v42, %v2862_v13  ;;  %v1349_v44 = vsel %vm1327_vm6, %v1316_v24, %v2863_v50  ;;  %v3140_v24 = vld [vmem:[%s3293_s28 + $0x140] sm:$0xff] }
 0x14e   : > { %v2871_v36 = vpop.permute.xlu0 %2870 }
 0x14f   : > { %v2873_v3 = vunpack.i.h.bf16 %v2871_v36  ;;  %v2872_v38 = vunpack.i.l.bf16 %v2871_v36  ;;  %v1383_v35 = vsel %vm1360_vm7, %v1350_v48, %v2877_v23  ;;  %v1384_v39 = vsel %vm1360_vm7, %v1351_v16, %v2878_v56  ;;  %v3143_v16 = vld [vmem:[%s3293_s28 + $0x120] sm:$0xff] }
 0x150   : > { %v2886_v21 = vpop.permute.xlu1 %2885  ;;  %v1254_v48 = vsel %vm1228_vm3, %v3142_v10, %v2473_v63  ;;  %v1253_v4 = vsel %vm1228_vm3, %v3143_v16, %v2472_v18 }
 0x151   : > { %v2888_v31 = vunpack.i.h.bf16 %v2886_v21  ;;  %v2887_v29 = vunpack.i.l.bf16 %v2886_v21  ;;  %v1381_v46 = vsel %vm1360_vm7, %v1348_v20, %v2872_v38  ;;  %v1382_v58 = vsel %vm1360_vm7, %v1349_v44, %v2873_v3  ;;  %v3141_v38 = vld [vmem:[%s3293_s28 + $0x138] sm:$0xff] }
 0x152   : > { %v2881_v22 = vpop.permute.xlu0 %2880  ;;  %v1256_v3 = vsel %vm1228_vm3, %v3140_v24, %v2478_v40 }
 0x153   : > { %v2883_v0 = vunpack.i.h.bf16 %v2881_v22  ;;  %v2882_v7 = vunpack.i.l.bf16 %v2881_v22  ;;  %v1416_v17 = vsel %vm1393_vm8, %v1383_v35, %v2887_v29  ;;  %v1417_v59 = vsel %vm1393_vm8, %v1384_v39, %v2888_v31 }
 0x154   : > { %v2896_v25 = vpop.permute.xlu1 %2895 }
 0x155   : > { %v2898_v61 = vunpack.i.h.bf16 %v2896_v25  ;;  %v2897_v55 = vunpack.i.l.bf16 %v2896_v25  ;;  %v1414_v47 = vsel %vm1393_vm8, %v1381_v46, %v2882_v7  ;;  %v1415_v45 = vsel %vm1393_vm8, %v1382_v58, %v2883_v0 }
 0x156   : > { %v2891_v34 = vpop.permute.xlu0 %2890  ;;  %v1255_v25 = vsel %vm1228_vm3, %v3141_v38, %v2477_v1 }
 0x157   : > { %v2893_v28 = vunpack.i.h.bf16 %v2891_v34  ;;  %v2892_v60 = vunpack.i.l.bf16 %v2891_v34  ;;  %v1449_v51 = vsel %vm1426_vm9, %v1416_v17, %v2897_v55  ;;  %v1450_v43 = vsel %vm1426_vm9, %v1417_v59, %v2898_v61 }
 0x158   : > { %v2906_v49 = vpop.permute.xlu1 %2905 }
 0x159   : > { %v2908_v41 = vunpack.i.h.bf16 %v2906_v49  ;;  %v2907_v19 = vunpack.i.l.bf16 %v2906_v49  ;;  %v1447_v15 = vsel %vm1426_vm9, %v1414_v47, %v2892_v60  ;;  %v1448_v6 = vsel %vm1426_vm9, %v1415_v45, %v2893_v28 }
 0x15a   : > { %v2901_v37 = vpop.permute.xlu0 %2900 }
 0x15b   : > { %v1482_v33 = vsel %vm1459_vm10, %v1449_v51, %v2907_v19  ;;  %v1483_v53 = vsel %vm1459_vm10, %v1450_v43, %v2908_v41  ;;  %v2903_v36 = vunpack.i.h.bf16 %v2901_v37  ;;  %v2902_v14 = vunpack.i.l.bf16 %v2901_v37 }
 0x15c   : > { %v2916_v5 = vpop.permute.xlu1 %2915  ;;  %v1503_v57 = vpack.c.bf16 %v1483_v53, %v1482_v33 }
 0x15d   : > { %v1480_v62 = vsel %vm1459_vm10, %v1447_v15, %v2902_v14  ;;  %v1481_v9 = vsel %vm1459_vm10, %v1448_v6, %v2903_v36  ;;  %v2918_v27 = vunpack.i.h.bf16 %v2916_v5  ;;  %v2917_v22 = vunpack.i.l.bf16 %v2916_v5 }
 0x15e   : > { %v1502_v12 = vpack.c.bf16 %v1481_v9, %v1480_v62  ;;  %v2911_v54 = vpop.permute.xlu0 %2910 }
 0x15f   : > { %v2913_v50 = vunpack.i.h.bf16 %v2911_v54  ;;  %v2912_v13 = vunpack.i.l.bf16 %v2911_v54  ;;  %v1289_v7 = vsel %vm1261_vm4, %v1256_v3, %v2918_v27  ;;  %v1288_v61 = vsel %vm1261_vm4, %v1255_v25, %v2917_v22 }
 0x160   : > { %2340 = vmatprep.mubr.msk.bf16.mxu1 %vm1528_vm11, %v1502_v12  ;;  %v2926_v2 = vpop.permute.xlu1 %2925 }
 0x161   : > { %2341 = vmatmul.mubr.msk.bf16.gmra.mrb[4].mxu1 %vm1528_vm11, %v1503_v57  ;;  %v2928_v56 = vunpack.i.h.bf16 %v2926_v2  ;;  %v2927_v23 = vunpack.i.l.bf16 %v2926_v2  ;;  %v1286_v20 = vsel %vm1261_vm4, %v1253_v4, %v2912_v13  ;;  %v1287_v44 = vsel %vm1261_vm4, %v1254_v48, %v2913_v50 }
 0x162   : > { %v2921_v21 = vpop.permute.xlu0 %2920 }
 0x163   : > { %v2923_v31 = vunpack.i.h.bf16 %v2921_v21  ;;  %v2922_v29 = vunpack.i.l.bf16 %v2921_v21  ;;  %v1321_v35 = vsel %vm1294_vm5, %v1288_v61, %v2927_v23  ;;  %v1322_v39 = vsel %vm1294_vm5, %v1289_v7, %v2928_v56 }
 0x164   : > { %v2936_v8 = vpop.permute.xlu1 %2935  ;;  %v2488_v7 = vunpack.i.h.bf16 %v3805_v26  ;;  %v2487_v61 = vunpack.i.l.bf16 %v3805_v26 }
 0x165   : > { %v2938_v55 = vunpack.i.h.bf16 %v2936_v8  ;;  %v2937_v34 = vunpack.i.l.bf16 %v2936_v8  ;;  %v1319_v17 = vsel %vm1294_vm5, %v1286_v20, %v2922_v29  ;;  %v1320_v59 = vsel %vm1294_vm5, %v1287_v44, %v2923_v31 }
 0x166   : > { %v2931_v52 = vpop.permute.xlu0 %2930 }
 0x167   : > { %v2933_v58 = vunpack.i.h.bf16 %v2931_v52  ;;  %v2932_v28 = vunpack.i.l.bf16 %v2931_v52  ;;  %v1354_v45 = vsel %vm1327_vm6, %v1321_v35, %v2937_v34  ;;  %v1355_v51 = vsel %vm1327_vm6, %v1322_v39, %v2938_v55  ;;  %v5051_v55 = vld [vmem:[#allocation5_spill] sm:$0xff] }
 0x168   : > { %v2946_v32 = vpop.permute.xlu1 %2945  ;;  %v2483_v34 = vunpack.i.h.bf16 %v5051_v55  ;;  %v2482_v20 = vunpack.i.l.bf16 %v5051_v55 }
 0x169   : > { %v2948_v60 = vunpack.i.h.bf16 %v2946_v32  ;;  %v2947_v49 = vunpack.i.l.bf16 %v2946_v32  ;;  %v1352_v6 = vsel %vm1327_vm6, %v1319_v17, %v2932_v28  ;;  %v1353_v5 = vsel %vm1327_vm6, %v1320_v59, %v2933_v58 }
 0x16a   : > { %v2941_v42 = vpop.permute.xlu0 %2940  ;;  %v1260_v17 = vsel %vm1228_vm3, %v4138_v30, %v2488_v7  ;;  %v1259_v59 = vsel %vm1228_vm3, %v4135_v11, %v2487_v61 }
 0x16b   : > { %v2943_v41 = vunpack.i.h.bf16 %v2941_v42  ;;  %v2942_v19 = vunpack.i.l.bf16 %v2941_v42  ;;  %v1387_v57 = vsel %vm1360_vm7, %v1354_v45, %v2947_v49  ;;  %v1388_v62 = vsel %vm1360_vm7, %v1355_v51, %v2948_v60 }
 0x16c   : > { %v2956_v0 = vpop.permute.xlu1 %2955 }
 0x16d   : > { %v2958_v43 = vunpack.i.h.bf16 %v2956_v0  ;;  %v2957_v37 = vunpack.i.l.bf16 %v2956_v0  ;;  %v1385_v9 = vsel %vm1360_vm7, %v1352_v6, %v2942_v19  ;;  %v1386_v12 = vsel %vm1360_vm7, %v1353_v5, %v2943_v41  ;;  %v3144_v41 = vld [vmem:[%s3293_s28 + $0x158] sm:$0xff]  ;;  %v3145_v19 = vld [vmem:[%s3293_s28 + $0x150] sm:$0xff] }
 0x16e   : > { %v2951_v46 = vpop.permute.xlu0 %2950  ;;  %v1258_v26 = vsel %vm1228_vm3, %v3144_v41, %v2483_v34 }
 0x16f   : > { %v2953_v33 = vunpack.i.h.bf16 %v2951_v46  ;;  %v2952_v53 = vunpack.i.l.bf16 %v2951_v46  ;;  %v1420_v8 = vsel %vm1393_vm8, %v1387_v57, %v2957_v37  ;;  %v1421_v52 = vsel %vm1393_vm8, %v1388_v62, %v2958_v43 }
 0x170   : > { %v2966_v47 = vpop.permute.xlu1 %2965 }
 0x171   : > { %v2968_v36 = vunpack.i.h.bf16 %v2966_v47  ;;  %v2967_v14 = vunpack.i.l.bf16 %v2966_v47  ;;  %v1418_v63 = vsel %vm1393_vm8, %v1385_v9, %v2952_v53  ;;  %v1419_v18 = vsel %vm1393_vm8, %v1386_v12, %v2953_v33 }
 0x172   : > { %v2961_v15 = vpop.permute.xlu0 %2960  ;;  %v1257_v47 = vsel %vm1228_vm3, %v3145_v19, %v2482_v20 }
 0x173   : > { %v2963_v54 = vunpack.i.h.bf16 %v2961_v15  ;;  %v2962_v2 = vunpack.i.l.bf16 %v2961_v15  ;;  %v1453_v32 = vsel %vm1426_vm9, %v1420_v8, %v2967_v14  ;;  %v1454_v27 = vsel %vm1426_vm9, %v1421_v52, %v2968_v36 }
 0x174   : > { %v2976_v21 = vpop.permute.xlu1 %2975 }
 0x175   : > { %v2978_v40 = vunpack.i.h.bf16 %v2976_v21  ;;  %v2977_v1 = vunpack.i.l.bf16 %v2976_v21  ;;  %v1451_v42 = vsel %vm1426_vm9, %v1418_v63, %v2962_v2  ;;  %v1452_v24 = vsel %vm1426_vm9, %v1419_v18, %v2963_v54 }
 0x176   : > { %v2971_v22 = vpop.permute.xlu0 %2970 }
 0x177   : > { %v1486_v50 = vsel %vm1459_vm10, %v1453_v32, %v2977_v1  ;;  %v1487_v13 = vsel %vm1459_vm10, %v1454_v27, %v2978_v40  ;;  %v2973_v56 = vunpack.i.h.bf16 %v2971_v22  ;;  %v2972_v23 = vunpack.i.l.bf16 %v2971_v22 }
 0x178   : > { %v2986_v3 = vpop.permute.xlu1 %2985  ;;  %v1505_v38 = vpack.c.bf16 %v1487_v13, %v1486_v50 }
 0x179   : > { %v1484_v25 = vsel %vm1459_vm10, %v1451_v42, %v2972_v23  ;;  %v1485_v10 = vsel %vm1459_vm10, %v1452_v24, %v2973_v56  ;;  %v2988_v35 = vunpack.i.h.bf16 %v2986_v3  ;;  %v2987_v39 = vunpack.i.l.bf16 %v2986_v3 }
 0x17a   : > { %v1504_v48 = vpack.c.bf16 %v1485_v10, %v1484_v25  ;;  %v2981_v16 = vpop.permute.xlu0 %2980 }
 0x17b   : > { %v2983_v46 = vunpack.i.h.bf16 %v2981_v16  ;;  %v2982_v58 = vunpack.i.l.bf16 %v2981_v16  ;;  %v1293_v37 = vsel %vm1261_vm4, %v1260_v17, %v2988_v35  ;;  %v1292_v33 = vsel %vm1261_vm4, %v1259_v59, %v2987_v39 }
 0x17c   : > { %2344 = vmatprep.mubr.msk.bf16.mxu1 %vm1528_vm11, %v1504_v48  ;;  %v2996_v4 = vpop.permute.xlu1 %2995 }
 0x17d   : > { %2345 = vmatmul.mubr.msk.bf16.gmra.mrb[8].mxu1 %vm1528_vm11, %v1505_v38  ;;  %v2998_v28 = vunpack.i.h.bf16 %v2996_v4  ;;  %v2997_v60 = vunpack.i.l.bf16 %v2996_v4  ;;  %v1290_v30 = vsel %vm1261_vm4, %v1257_v47, %v2982_v58  ;;  %v1291_v14 = vsel %vm1261_vm4, %v1258_v26, %v2983_v46 }
 0x17e   : > { %v2991_v31 = vpop.permute.xlu0 %2990 }
 0x17f   : > { %v2993_v45 = vunpack.i.h.bf16 %v2991_v31  ;;  %v2992_v51 = vunpack.i.l.bf16 %v2991_v31  ;;  %v1325_v11 = vsel %vm1294_vm5, %v1292_v33, %v2997_v60  ;;  %v1326_v15 = vsel %vm1294_vm5, %v1293_v37, %v2998_v28 }
 0x180   : > { %v3006_v29 = vpop.permute.xlu1 %3005 }
 0x181   : > { %v3008_v53 = vunpack.i.h.bf16 %v3006_v29  ;;  %v3007_v36 = vunpack.i.l.bf16 %v3006_v29  ;;  %v1323_v12 = vsel %vm1294_vm5, %v1290_v30, %v2992_v51  ;;  %v1324_v54 = vsel %vm1294_vm5, %v1291_v14, %v2993_v45 }
 0x182   : > { %v3001_v0 = vpop.permute.xlu0 %3000 }
 0x183   : > { %v3003_v5 = vunpack.i.h.bf16 %v3001_v0  ;;  %v3002_v57 = vunpack.i.l.bf16 %v3001_v0  ;;  %v1358_v52 = vsel %vm1327_vm6, %v1325_v11, %v3007_v36  ;;  %v1359_v40 = vsel %vm1327_vm6, %v1326_v15, %v3008_v53 }
 0x184   : > { %v3016_v44 = vpop.permute.xlu1 %3015 }
 0x185   : > { %v3018_v62 = vunpack.i.h.bf16 %v3016_v44  ;;  %v3017_v9 = vunpack.i.l.bf16 %v3016_v44  ;;  %v1356_v13 = vsel %vm1327_vm6, %v1323_v12, %v3002_v57  ;;  %v1357_v56 = vsel %vm1327_vm6, %v1324_v54, %v3003_v5 }
 0x186   : > { %v3011_v49 = vpop.permute.xlu0 %3010 }
 0x187   : > { %v3013_v2 = vunpack.i.h.bf16 %v3011_v49  ;;  %v3012_v21 = vunpack.i.l.bf16 %v3011_v49  ;;  %v1391_v23 = vsel %vm1360_vm7, %v1358_v52, %v3017_v9  ;;  %v1392_v42 = vsel %vm1360_vm7, %v1359_v40, %v3018_v62 }
 0x188   : > { %v3026_v43 = vpop.permute.xlu1 %3025 }
 0x189   : > { %v3028_v1 = vunpack.i.h.bf16 %v3026_v43  ;;  %v3027_v63 = vunpack.i.l.bf16 %v3026_v43  ;;  %v1389_v24 = vsel %vm1360_vm7, %v1356_v13, %v3012_v21  ;;  %v1390_v3 = vsel %vm1360_vm7, %v1357_v56, %v3013_v2 }
 0x18a   : > { %v3021_v6 = vpop.permute.xlu0 %3020 }
 0x18b   : > { %v3023_v18 = vunpack.i.h.bf16 %v3021_v6  ;;  %v3022_v32 = vunpack.i.l.bf16 %v3021_v6  ;;  %v1424_v48 = vsel %vm1393_vm8, %v1391_v23, %v3027_v63  ;;  %v1425_v16 = vsel %vm1393_vm8, %v1392_v42, %v3028_v1 }
 0x18c   : > { %v3036_v8 = vpop.permute.xlu1 %3035 }
 0x18d   : > { %v3038_v27 = vunpack.i.h.bf16 %v3036_v8  ;;  %v3037_v22 = vunpack.i.l.bf16 %v3036_v8  ;;  %v1422_v29 = vsel %vm1393_vm8, %v1389_v24, %v3022_v32  ;;  %v1423_v0 = vsel %vm1393_vm8, %v1390_v3, %v3023_v18 }
 0x18e   : > { %v3031_v50 = vpop.permute.xlu0 %3030 }
 0x18f   : > { %v3033_v38 = vunpack.i.h.bf16 %v3031_v50  ;;  %v3032_v25 = vunpack.i.l.bf16 %v3031_v50  ;;  %v1457_v7 = vsel %vm1426_vm9, %v1424_v48, %v3037_v22  ;;  %v1458_v61 = vsel %vm1426_vm9, %v1425_v16, %v3038_v27 }
 0x190   : > { %v3046_v10 = vpop.permute.xlu1 %3045 }
 0x191   : > { %v3048_v4 = vunpack.i.h.bf16 %v3046_v10  ;;  %v3047_v31 = vunpack.i.l.bf16 %v3046_v10  ;;  %v1455_v39 = vsel %vm1426_vm9, %v1422_v29, %v3032_v25  ;;  %v1456_v46 = vsel %vm1426_vm9, %v1423_v0, %v3033_v38 }
 0x192   : > { %v3041_v55 = vpop.permute.xlu0 %3040 }
 0x193   : > { %v1490_v34 = vsel %vm1459_vm10, %v1457_v7, %v3047_v31  ;;  %v1491_v20 = vsel %vm1459_vm10, %v1458_v61, %v3048_v4  ;;  %v3043_v44 = vunpack.i.h.bf16 %v3041_v55  ;;  %v3042_v35 = vunpack.i.l.bf16 %v3041_v55 }
 0x194   : > { %v1507_v58 = vpack.c.bf16 %v1491_v20, %v1490_v34 }
 0x195   : > { %v1488_v28 = vsel %vm1459_vm10, %v1455_v39, %v3042_v35  ;;  %v1489_v60 = vsel %vm1459_vm10, %v1456_v46, %v3043_v44 }
 0x196   : > { %v1506_v49 = vpack.c.bf16 %v1489_v60, %v1488_v28 }
 0x198   : > { %2348 = vmatprep.mubr.msk.bf16.mxu1 %vm1528_vm11, %v1506_v49 }
 0x199   : > { %2349 = vmatmul.mubr.msk.bf16.gmra.mrb[12].mxu1 %vm1528_vm11, %v1507_v58 }
 0x1bb   : > { %v4501_v17 = vpop.f32.mrb[0].mxu0 }
 0x1bc   : > { %v4503_v59 = vpop.f32.mrb[1].mxu0  ;;  %v1782_v51 = vmul.f32 %v4501_v17, %v4501_v17 }
 0x1bd   : > { %v4505_v41 = vpop.f32.mrb[2].mxu0  ;;  %v1780_v19 = vmul.f32 %v4503_v59, %v4503_v59 }
 0x1be   : > { %v4507_v26 = vpop.f32.mrb[3].mxu0  ;;  %v1783_v33 = vmul.f32 %v4505_v41, %v4505_v41 }
 0x1bf   : > { %v1742_v47 = vadd.f32 %v4507_v26, %v4503_v59  ;;  %v1781_v45 = vmul.f32 %v4507_v26, %v4507_v26 }
 0x1c1   : > { %v1743_v43 = vadd.f32 %v4501_v17, %v1742_v47  ;;  %v1812_v37 = vadd.f32 %v1781_v45, %v1780_v19 }
 0x1c3   : > { %v1813_v53 = vadd.f32 %v1812_v37, %v1782_v51  ;;  %v1744_v36 = vadd.f32 %v4505_v41, %v1743_v43 }
 0x1c5   : > { %v1814_v30 = vadd.f32 %v1813_v53, %v1783_v33 }
 0x1d3   : > { %v4521_v14 = vpop.f32.mrb[4].mxu0 }
 0x1d4   : > { %v4523_v11 = vpop.f32.mrb[5].mxu0  ;;  %v1786_v54 = vmul.f32 %v4521_v14, %v4521_v14 }
 0x1d5   : > { %v1745_v15 = vadd.f32 %v1744_v36, %v4523_v11  ;;  %v1784_v6 = vmul.f32 %v4523_v11, %v4523_v11  ;;  %v4528_v5 = vpop.f32.mrb[6].mxu0 }
 0x1d6   : > { %v4530_v57 = vpop.f32.mrb[7].mxu0  ;;  %v1787_v8 = vmul.f32 %v4528_v5, %v4528_v5 }
 0x1d7   : > { %v1815_v62 = vadd.f32 %v1814_v30, %v1784_v6  ;;  %v1746_v9 = vadd.f32 %v1745_v15, %v4530_v57  ;;  %v1785_v12 = vmul.f32 %v4530_v57, %v4530_v57 }
 0x1d9   : > { %v1747_v2 = vadd.f32 %v4521_v14, %v1746_v9  ;;  %v1816_v21 = vadd.f32 %v1815_v62, %v1785_v12 }
 0x1db   : > { %v1817_v52 = vadd.f32 %v1816_v21, %v1786_v54  ;;  %v1748_v40 = vadd.f32 %v4528_v5, %v1747_v2 }
 0x1dd   : > { %v1818_v1 = vadd.f32 %v1817_v52, %v1787_v8 }
 0x1eb   : > { %v4541_v63 = vpop.f32.mrb[8].mxu0 }
 0x1ec   : > { %v4543_v18 = vpop.f32.mrb[9].mxu0  ;;  %v1790_v42 = vmul.f32 %v4541_v63, %v4541_v63 }
 0x1ed   : > { %v1749_v32 = vadd.f32 %v1748_v40, %v4543_v18  ;;  %v1788_v27 = vmul.f32 %v4543_v18, %v4543_v18  ;;  %v4548_v22 = vpop.f32.mrb[10].mxu0 }
 0x1ee   : > { %v4550_v50 = vpop.f32.mrb[11].mxu0  ;;  %v1791_v38 = vmul.f32 %v4548_v22, %v4548_v22 }
 0x1ef   : > { %v1819_v13 = vadd.f32 %v1818_v1, %v1788_v27  ;;  %v1750_v56 = vadd.f32 %v1749_v32, %v4550_v50  ;;  %v1789_v23 = vmul.f32 %v4550_v50, %v4550_v50 }
 0x1f1   : > { %v1751_v24 = vadd.f32 %v4541_v63, %v1750_v56  ;;  %v1820_v3 = vadd.f32 %v1819_v13, %v1789_v23 }
 0x1f3   : > { %v1821_v25 = vadd.f32 %v1820_v3, %v1790_v42  ;;  %v1752_v10 = vadd.f32 %v4548_v22, %v1751_v24 }
 0x1f5   : > { %v1822_v48 = vadd.f32 %v1821_v25, %v1791_v38 }
 0x203   : > { %v4561_v16 = vpop.f32.mrb[12].mxu0 }
 0x204   : > { %v4563_v4 = vpop.f32.mrb[13].mxu0  ;;  %v1794_v20 = vmul.f32 %v4561_v16, %v4561_v16 }
 0x205   : > { %v1753_v31 = vadd.f32 %v1752_v10, %v4563_v4  ;;  %v1792_v29 = vmul.f32 %v4563_v4, %v4563_v4  ;;  %v4568_v0 = vpop.f32.mrb[14].mxu0 }
 0x206   : > { %v4570_v7 = vpop.f32.mrb[15].mxu0  ;;  %v1795_v39 = vmul.f32 %v4568_v0, %v4568_v0 }
 0x207   : > { %v1823_v61 = vadd.f32 %v1822_v48, %v1792_v29  ;;  %v1754_v55 = vadd.f32 %v1753_v31, %v4570_v7  ;;  %v1793_v34 = vmul.f32 %v4570_v7, %v4570_v7 }
 0x209   : > { %v1755_v44 = vadd.f32 %v4561_v16, %v1754_v55  ;;  %v1824_v35 = vadd.f32 %v1823_v61, %v1793_v34 }
 0x20b   : > { %v1825_v46 = vadd.f32 %v1824_v35, %v1794_v20  ;;  %v1756_v58 = vadd.f32 %v4568_v0, %v1755_v44 }
 0x20d   : > { %v1826_v28 = vadd.f32 %v1825_v46, %v1795_v39 }
 0x21b   : > { %v4581_v60 = vpop.f32.mrb[0].mxu1 }
 0x21c   : > { %v4583_v49 = vpop.f32.mrb[1].mxu1  ;;  %v1798_v53 = vmul.f32 %v4581_v60, %v4581_v60 }
 0x21d   : > { %v1757_v19 = vadd.f32 %v1756_v58, %v4583_v49  ;;  %v1796_v47 = vmul.f32 %v4583_v49, %v4583_v49  ;;  %v4588_v45 = vpop.f32.mrb[2].mxu1 }
 0x21e   : > { %v4590_v51 = vpop.f32.mrb[3].mxu1  ;;  %v1799_v15 = vmul.f32 %v4588_v45, %v4588_v45 }
 0x21f   : > { %v1827_v43 = vadd.f32 %v1826_v28, %v1796_v47  ;;  %v1758_v37 = vadd.f32 %v1757_v19, %v4590_v51  ;;  %v1797_v33 = vmul.f32 %v4590_v51, %v4590_v51 }
 0x221   : > { %v1759_v36 = vadd.f32 %v4581_v60, %v1758_v37  ;;  %v1828_v30 = vadd.f32 %v1827_v43, %v1797_v33 }
 0x223   : > { %v1829_v6 = vadd.f32 %v1828_v30, %v1798_v53  ;;  %v1760_v62 = vadd.f32 %v4588_v45, %v1759_v36 }
 0x225   : > { %v1830_v9 = vadd.f32 %v1829_v6, %v1799_v15 }
 0x234   : > { %v4601_v12 = vpop.f32.mrb[4].mxu1 }
 0x235   : > { %v4603_v54 = vpop.f32.mrb[5].mxu1  ;;  %v1802_v27 = vmul.f32 %v4601_v12, %v4601_v12 }
 0x236   : > { %v1761_v2 = vadd.f32 %v1760_v62, %v4603_v54  ;;  %v1800_v21 = vmul.f32 %v4603_v54, %v4603_v54  ;;  %v4608_v8 = vpop.f32.mrb[6].mxu1 }
 0x237   : > { %v4610_v52 = vpop.f32.mrb[7].mxu1  ;;  %v1803_v23 = vmul.f32 %v4608_v8, %v4608_v8 }
 0x238   : > { %v1831_v40 = vadd.f32 %v1830_v9, %v1800_v21  ;;  %v1762_v1 = vadd.f32 %v1761_v2, %v4610_v52  ;;  %v1801_v32 = vmul.f32 %v4610_v52, %v4610_v52 }
 0x23a   : > { %v1763_v13 = vadd.f32 %v4601_v12, %v1762_v1  ;;  %v1832_v56 = vadd.f32 %v1831_v40, %v1801_v32 }
 0x23c   : > { %v1833_v42 = vadd.f32 %v1832_v56, %v1802_v27  ;;  %v1764_v24 = vadd.f32 %v4608_v8, %v1763_v13 }
 0x23e   : > { %v1834_v3 = vadd.f32 %v1833_v42, %v1803_v23 }
 0x250   : > { %v4621_v38 = vpop.f32.mrb[8].mxu1 }
 0x251   : > { %v4623_v25 = vpop.f32.mrb[9].mxu1  ;;  %v1806_v20 = vmul.f32 %v4621_v38, %v4621_v38 }
 0x252   : > { %v1765_v10 = vadd.f32 %v1764_v24, %v4623_v25  ;;  %v1804_v48 = vmul.f32 %v4623_v25, %v4623_v25  ;;  %v4628_v31 = vpop.f32.mrb[10].mxu1 }
 0x253   : > { %v4630_v29 = vpop.f32.mrb[11].mxu1  ;;  %v1807_v39 = vmul.f32 %v4628_v31, %v4628_v31 }
 0x254   : > { %v1835_v61 = vadd.f32 %v1834_v3, %v1804_v48  ;;  %v1766_v55 = vadd.f32 %v1765_v10, %v4630_v29  ;;  %v1805_v34 = vmul.f32 %v4630_v29, %v4630_v29 }
 0x256   : > { %v1767_v44 = vadd.f32 %v4621_v38, %v1766_v55  ;;  %v1836_v35 = vadd.f32 %v1835_v61, %v1805_v34 }
 0x258   : > { %v1837_v46 = vadd.f32 %v1836_v35, %v1806_v20  ;;  %v1768_v58 = vadd.f32 %v4628_v31, %v1767_v44 }
 0x25a   : > { %v1838_v28 = vadd.f32 %v1837_v46, %v1807_v39 }
 0x26c   : > { %v4641_v19 = vpop.f32.mrb[12].mxu1 }
 0x26d   : > { %v4643_v47 = vpop.f32.mrb[13].mxu1  ;;  %v1810_v6 = vmul.f32 %v4641_v19, %v4641_v19 }
 0x26e   : > { %v1769_v43 = vadd.f32 %v1768_v58, %v4643_v47  ;;  %v1808_v37 = vmul.f32 %v4643_v47, %v4643_v47  ;;  %v4648_v33 = vpop.f32.mrb[14].mxu1  ;;  %v1858_v58 = vlaneseq }
 0x26f   : > { %v1730_v53 = vpop.f32.mrb[15].mxu1  ;;  %v1811_v2 = vmul.f32 %v4648_v33, %v4648_v33 }
 0x270   : > { %v1839_v36 = vadd.f32 %v1838_v28, %v1808_v37  ;;  %v1770_v30 = vadd.f32 %v1769_v43, %v1730_v53  ;;  %v1809_v15 = vmul.f32 %v1730_v53, %v1730_v53  ;;  %v1859_v28 = vshrl.u32 %v1858_v58, 7  ;;  %v1853_v43 = vld [vmem:[%s4988_s2] sm:$0x1] }
 0x272   : > { %v1771_v62 = vadd.f32 %v4641_v19, %v1770_v30  ;;  %v1840_v9 = vadd.f32 %v1839_v36, %v1809_v15  ;;  %v1860_v37 = vsub.s32 0, %v1859_v28  ;;  %v1854_v15 = vld [vmem:[%s4988_s2 + $0x1] sm:$0x1] }
 0x274   : > { %v1772_v21 = vadd.f32 %v4648_v33, %v1771_v62  ;;  %v1841_v40 = vadd.f32 %v1840_v9, %v1810_v6 }
 0x276   : > { %v1773_v1 = vrot.slane %v1772_v21, 4  ;;  %v1842_v32 = vadd.f32 %v1841_v40, %v1811_v2 }
 0x278   : > { %v1774_v27 = vadd.f32 %v1773_v1, %v1772_v21  ;;  %v1843_v13 = vrot.slane %v1842_v32, 4 }
 0x27a   : > { %v1775_v56 = vrot.slane %v1774_v27, 2  ;;  %v1844_v23 = vadd.f32 %v1843_v13, %v1842_v32 }
 0x27c   : > { %v1776_v42 = vadd.f32 %v1775_v56, %v1774_v27  ;;  %v1845_v24 = vrot.slane %v1844_v23, 2 }
 0x27e   : > { %v1777_v3 = vrot.slane %v1776_v42, 1  ;;  %v1846_v10 = vadd.f32 %v1845_v24, %v1844_v23 }
 0x280   : > { %v1778_v48 = vadd.f32 %v1777_v3, %v1776_v42  ;;  %v1847_v61 = vrot.slane %v1846_v10, 1 }
 0x282   : > { %v1779_v55 = vmul.f32 0.00390625, %v1778_v48  ;;  %v1848_v34 = vadd.f32 %v1847_v61, %v1846_v10 }
 0x284   : > { %v1849_v20 = vmul.f32 0.00390625, %v1848_v34  ;;  %v1850_v44 = vmul.f32 %v1779_v55, %v1779_v55 }
 0x286   : > { %v1851_v35 = vsub.f32 %v1849_v20, %v1850_v44 }
 0x288   : > { %v1852_v39 = vmax.f32 %v1851_v35, 0.0 }
 0x28a   : > { %v1855_v46 = vadd.f32 1e-05, %v1852_v39 }
 0x28c   : > { %3052 = vrsqrt.f32 %v1855_v46 }
 0x296   : > { %v3053_v36 = vpop.eup %3052 }
 0x297   : > { %v1857_v30 = vmul.f32 %v3053_v36, %v1853_v43 }
 0x299   : > { %v1861_v6 = vrot.slane %v1857_v30, %v1860_v37  ;;  %v1894_v62 = vmul.f32 %v1857_v30, %v1779_v55 }
 0x29b   : > { %v1891_v9 = vmul.f32 %v1861_v6, %v1730_v53  ;;  %v1895_v2 = vsub.f32 %v1854_v15, %v1894_v62  ;;  %v1862_v21 = vmul.f32 %v1861_v6, %v4503_v59  ;;  %v1863_v40 = vmul.f32 %v1861_v6, %v4507_v26 }
 0x29c   : > { %v1864_v1 = vmul.f32 %v4501_v17, %v1861_v6  ;;  %v1865_v32 = vmul.f32 %v4505_v41, %v1861_v6  ;;  %v1866_v27 = vmul.f32 %v1861_v6, %v4523_v11  ;;  %v1867_v13 = vmul.f32 %v1861_v6, %v4530_v57 }
 0x29d   : > { %v1899_v56 = vrot.slane %v1895_v2, %v1860_v37  ;;  %v1868_v23 = vmul.f32 %v4521_v14, %v1861_v6  ;;  %v1869_v42 = vmul.f32 %v4528_v5, %v1861_v6  ;;  %v1870_v53 = vmul.f32 %v1861_v6, %v4543_v18 }
 0x29e   : > { %v1871_v24 = vmul.f32 %v1861_v6, %v4550_v50  ;;  %v1872_v59 = vmul.f32 %v4541_v63, %v1861_v6  ;;  %v1873_v26 = vmul.f32 %v4548_v22, %v1861_v6  ;;  %v1874_v17 = vmul.f32 %v1861_v6, %v4563_v4 }
 0x29f   : > { %v1929_v41 = vadd.f32 %v1899_v56, %v1891_v9  ;;  %v1875_v11 = vmul.f32 %v1861_v6, %v4570_v7  ;;  %v1876_v57 = vmul.f32 %v4561_v16, %v1861_v6  ;;  %v1877_v3 = vmul.f32 %v4568_v0, %v1861_v6 }
 0x2a0   : > { %v1878_v14 = vmul.f32 %v1861_v6, %v4583_v49  ;;  %v1879_v5 = vmul.f32 %v1861_v6, %v4590_v51  ;;  %v1880_v18 = vmul.f32 %v4581_v60, %v1861_v6  ;;  %v1881_v50 = vmul.f32 %v4588_v45, %v1861_v6 }
 0x2a1   : > { %v1993_v63 = vmin.f32 %v1929_v41, 0.0  ;;  %v1882_v22 = vmul.f32 %v1861_v6, %v4603_v54  ;;  %v1883_v4 = vmul.f32 %v1861_v6, %v4610_v52  ;;  %v1884_v10 = vmul.f32 %v4601_v12, %v1861_v6 }
 0x2a2   : > { %v1885_v7 = vmul.f32 %v4608_v8, %v1861_v6  ;;  %v1886_v16 = vmul.f32 %v1861_v6, %v4623_v25  ;;  %v1887_v0 = vmul.f32 %v1861_v6, %v4630_v29  ;;  %v1888_v51 = vmul.f32 %v4621_v38, %v1861_v6 }
 0x2a3   : > { %v2054_v49 = vmul.f32 1.442695, %v1993_v63  ;;  %v1889_v60 = vmul.f32 %v4628_v31, %v1861_v6  ;;  %v1890_v45 = vmul.f32 %v1861_v6, %v4643_v47  ;;  %v1892_v48 = vmul.f32 %v4641_v19, %v1861_v6 }
 0x2a4   : > { %v1893_v54 = vmul.f32 %v4648_v33, %v1861_v6  ;;  %v4693_v52 = vadd.f32 %v1899_v56, %v1862_v21  ;;  %v4695_v12 = vadd.f32 %v1899_v56, %v1863_v40  ;;  %v4697_v8 = vadd.f32 %v1899_v56, %v1864_v1 }
 0x2a5   : > { %3054 = vpow2.f32 %v2054_v49  ;;  %v4699_v25 = vadd.f32 %v1899_v56, %v1865_v32  ;;  %v4701_v29 = vadd.f32 %v1899_v56, %v1866_v27  ;;  %v4703_v38 = vadd.f32 %v1899_v56, %v1867_v13 }
 0x2a6   : > { %v4705_v31 = vadd.f32 %v1899_v56, %v1868_v23  ;;  %v4707_v47 = vadd.f32 %v1899_v56, %v1869_v42  ;;  %v4709_v19 = vadd.f32 %v1899_v56, %v1870_v53  ;;  %v4711_v33 = vadd.f32 %v1899_v56, %v1871_v24 }
 0x2a7   : > { %v4713_v61 = vadd.f32 %v1899_v56, %v1872_v59  ;;  %v4715_v55 = vadd.f32 %v1899_v56, %v1873_v26  ;;  %v4717_v34 = vadd.f32 %v1899_v56, %v1874_v17  ;;  %v4719_v20 = vadd.f32 %v1899_v56, %v1875_v11 }
 0x2a8   : > { %v4721_v44 = vadd.f32 %v1899_v56, %v1876_v57  ;;  %v4723_v35 = vadd.f32 %v1899_v56, %v1877_v3  ;;  %v4725_v39 = vadd.f32 %v1899_v56, %v1878_v14  ;;  %v4727_v46 = vadd.f32 %v1899_v56, %v1879_v5 }
 0x2a9   : > { %v4729_v58 = vadd.f32 %v1899_v56, %v1880_v18  ;;  %v4731_v28 = vadd.f32 %v1899_v56, %v1881_v50  ;;  %v4733_v43 = vadd.f32 %v1899_v56, %v1882_v22  ;;  %v4736_v37 = vadd.f32 %v1899_v56, %v1883_v4 }
 0x2aa   : > { %v4738_v36 = vadd.f32 %v1899_v56, %v1884_v10  ;;  %v4740_v30 = vadd.f32 %v1899_v56, %v1885_v7  ;;  %v4742_v15 = vadd.f32 %v1899_v56, %v1886_v16  ;;  %v4744_v6 = vadd.f32 %v1899_v56, %v1887_v0 }
 0x2ab   : > { %v4746_v62 = vadd.f32 %v1899_v56, %v1888_v51  ;;  %v4748_v9 = vadd.f32 %v1899_v56, %v1889_v60  ;;  %v4750_v2 = vadd.f32 %v1899_v56, %v1890_v45  ;;  %v4752_v21 = vadd.f32 %v1899_v56, %v1892_v48 }
 0x2ac   : > { %v4754_v40 = vadd.f32 %v1899_v56, %v1893_v54  ;;  %vm1961_vm12 = vcmp.gt.f32.partialorder %v1929_v41, 0.0  ;;  %v1964_v13 = vmin.f32 %v4693_v52, 0.0  ;;  %v1965_v23 = vmin.f32 %v4695_v12, 0.0 }
 0x2ad   : > { %v1966_v42 = vmin.f32 %v4697_v8, 0.0  ;;  %v1967_v53 = vmin.f32 %v4699_v25, 0.0  ;;  %v1968_v56 = vmin.f32 %v4701_v29, 0.0  ;;  %v1969_v24 = vmin.f32 %v4703_v38, 0.0 }
 0x2ae   : > { %v1970_v59 = vmin.f32 %v4705_v31, 0.0  ;;  %v1996_v26 = vmul.f32 1.442695, %v1964_v13  ;;  %v1998_v17 = vmul.f32 1.442695, %v1965_v23  ;;  %v1972_v3 = vmin.f32 %v4709_v19, 0.0 }
 0x2af   : > { %v3055_v1 = vpop.eup %3054  ;;  %v2000_v11 = vmul.f32 1.442695, %v1966_v42  ;;  %v2002_v57 = vmul.f32 1.442695, %v1967_v53  ;;  %v2004_v14 = vmul.f32 1.442695, %v1968_v56 }
 0x2b0   : > { %v2286_v32 = vadd.f32 -1.0, %v3055_v1  ;;  %3056 = vpow2.f32 %v1996_v26  ;;  %v1973_v5 = vmin.f32 %v4711_v33, 0.0  ;;  %v1974_v18 = vmin.f32 %v4713_v61, 0.0 }
 0x2b1   : > { %3058 = vpow2.f32 %v1998_v17  ;;  %v2006_v50 = vmul.f32 1.442695, %v1969_v24  ;;  %v1975_v63 = vmin.f32 %v4715_v55, 0.0  ;;  %v1976_v22 = vmin.f32 %v4717_v34, 0.0 }
 0x2b2   : > { %v2121_v27 = vsel %vm1961_vm12, %v1929_v41, %v2286_v32  ;;  %v1971_v41 = vmin.f32 %v4707_v47, 0.0  ;;  %3060 = vpow2.f32 %v2000_v11  ;;  %v2008_v4 = vmul.f32 1.442695, %v1970_v59 }
 0x2b3   : > { %2153 = vst [vmem:[%s4758_s5 + $0xe8] sm:$0xff] %v2121_v27  ;;  %v1977_v10 = vmin.f32 %v4719_v20, 0.0  ;;  %v1978_v7 = vmin.f32 %v4721_v44, 0.0  ;;  %3062 = vpow2.f32 %v2002_v57  ;;  %vm1932_vm13 = vcmp.gt.f32.partialorder %v4693_v52, 0.0 }
 0x2b4   : > { %v2010_v16 = vmul.f32 1.442695, %v1971_v41  ;;  %v1979_v0 = vmin.f32 %v4723_v35, 0.0  ;;  %v1980_v49 = vmin.f32 %v4725_v39, 0.0  ;;  %3064 = vpow2.f32 %v2004_v14 }
 0x2b5   : > { %v2012_v51 = vmul.f32 1.442695, %v1972_v3  ;;  %vm1933_vm14 = vcmp.gt.f32.partialorder %v4695_v12, 0.0  ;;  %v1981_v60 = vmin.f32 %v4727_v46, 0.0  ;;  %v1982_v45 = vmin.f32 %v4729_v58, 0.0 }
 0x2b6   : > { %3066 = vpow2.f32 %v2006_v50  ;;  %v2014_v48 = vmul.f32 1.442695, %v1973_v5  ;;  %vm1934_vm15 = vcmp.gt.f32.partialorder %v4697_v8, 0.0  ;;  %v1983_v54 = vmin.f32 %v4731_v28, 0.0 }
 0x2b7   : > { %v1984_v1 = vmin.f32 %v4733_v43, 0.0  ;;  %3068 = vpow2.f32 %v2008_v4  ;;  %v2016_v32 = vmul.f32 1.442695, %v1974_v18  ;;  %vm1935_vm0 = vcmp.gt.f32.partialorder %v4699_v25, 0.0 }
 0x2b8   : > { %v1985_v27 = vmin.f32 %v4736_v37, 0.0  ;;  %v1986_v13 = vmin.f32 %v4738_v36, 0.0  ;;  %3070 = vpow2.f32 %v2010_v16  ;;  %v2018_v23 = vmul.f32 1.442695, %v1975_v63 }
 0x2b9   : > { %vm1936_vm1 = vcmp.gt.f32.partialorder %v4701_v29, 0.0  ;;  %v1987_v42 = vmin.f32 %v4740_v30, 0.0  ;;  %v1988_v53 = vmin.f32 %v4742_v15, 0.0  ;;  %3072 = vpow2.f32 %v2012_v51 }
 0x2ba   : > { %v2020_v56 = vmul.f32 1.442695, %v1976_v22  ;;  %vm1937_vm2 = vcmp.gt.f32.partialorder %v4703_v38, 0.0  ;;  %v1989_v24 = vmin.f32 %v4744_v6, 0.0  ;;  %v1990_v59 = vmin.f32 %v4746_v62, 0.0  ;;  %v3057_v17 = vpop.eup %3056 }
 0x2bb   : > { %3074 = vpow2.f32 %v2014_v48  ;;  %v2022_v26 = vmul.f32 1.442695, %v1977_v10  ;;  %vm1938_vm3 = vcmp.gt.f32.partialorder %v4705_v31, 0.0  ;;  %v1991_v41 = vmin.f32 %v4748_v9, 0.0  ;;  %v3059_v3 = vpop.eup %3058 }
 0x2bc   : > { %v1992_v11 = vmin.f32 %v4750_v2, 0.0  ;;  %3076 = vpow2.f32 %v2016_v32  ;;  %v2024_v57 = vmul.f32 1.442695, %v1978_v7  ;;  %vm1939_vm4 = vcmp.gt.f32.partialorder %v4707_v47, 0.0  ;;  %v3061_v50 = vpop.eup %3060 }
 0x2bd   : > { %v1994_v14 = vmin.f32 %v4752_v21, 0.0  ;;  %3078 = vpow2.f32 %v2018_v23  ;;  %v2026_v5 = vmul.f32 1.442695, %v1979_v0  ;;  %v2257_v18 = vadd.f32 -1.0, %v3057_v17  ;;  %v3063_v10 = vpop.eup %3062 }
 0x2be   : > { %vm1940_vm5 = vcmp.gt.f32.partialorder %v4709_v19, 0.0  ;;  %v1995_v63 = vmin.f32 %v4754_v40, 0.0  ;;  %3080 = vpow2.f32 %v2020_v56  ;;  %v2028_v22 = vmul.f32 1.442695, %v1980_v49  ;;  %v3065_v51 = vpop.eup %3064 }
 0x2bf   : > { %v2258_v4 = vadd.f32 -1.0, %v3059_v3  ;;  %vm1941_vm6 = vcmp.gt.f32.partialorder %v4711_v33, 0.0  ;;  %3082 = vpow2.f32 %v2022_v26  ;;  %v2030_v7 = vmul.f32 1.442695, %v1981_v60 }
 0x2c0   : > { %v2259_v16 = vadd.f32 -1.0, %v3061_v50  ;;  %v2092_v0 = vsel %vm1932_vm13, %v4693_v52, %v2257_v18  ;;  %vm1942_vm7 = vcmp.gt.f32.partialorder %v4713_v61, 0.0  ;;  %3084 = vpow2.f32 %v2024_v57  ;;  %v3067_v23 = vpop.eup %3066 }
 0x2c1   : > { %v2032_v48 = vmul.f32 1.442695, %v1982_v45  ;;  %v2260_v32 = vadd.f32 -1.0, %v3063_v10  ;;  %v2093_v49 = vsel %vm1933_vm14, %v4695_v12, %v2258_v4  ;;  %2124 = vst [vmem:[%s4758_s5] sm:$0xff] %v2092_v0  ;;  %vm1943_vm8 = vcmp.gt.f32.partialorder %v4715_v55, 0.0  ;;  %v3069_v45 = vpop.eup %3068 }
 0x2c2   : > { %3086 = vpow2.f32 %v2026_v5  ;;  %v2034_v60 = vmul.f32 1.442695, %v1983_v54  ;;  %v2261_v56 = vadd.f32 -1.0, %v3065_v51  ;;  %v2094_v52 = vsel %vm1934_vm15, %v4697_v8, %v2259_v16  ;;  %2125 = vst [vmem:[%s4758_s5 + $0x8] sm:$0xff] %v2093_v49  ;;  %v3071_v54 = vpop.eup %3070 }
 0x2c3   : > { %vm1944_vm9 = vcmp.gt.f32.partialorder %v4717_v34, 0.0  ;;  %3088 = vpow2.f32 %v2028_v22  ;;  %v2036_v26 = vmul.f32 1.442695, %v1984_v1  ;;  %v2262_v17 = vadd.f32 -1.0, %v3067_v23  ;;  %2126 = vst [vmem:[%s4758_s5 + $0x10] sm:$0xff] %v2094_v52  ;;  %v3073_v1 = vpop.eup %3072 }
 0x2c4   : > { %v2095_v12 = vsel %vm1935_vm0, %v4699_v25, %v2260_v32  ;;  %vm1945_vm10 = vcmp.gt.f32.partialorder %v4719_v20, 0.0  ;;  %3090 = vpow2.f32 %v2030_v7  ;;  %v2038_v57 = vmul.f32 1.442695, %v1985_v27 }
 0x2c5   : > { %v2263_v8 = vadd.f32 -1.0, %v3069_v45  ;;  %v2096_v3 = vsel %vm1936_vm1, %v4701_v29, %v2261_v56  ;;  %2127 = vst [vmem:[%s4758_s5 + $0x18] sm:$0xff] %v2095_v12  ;;  %vm1946_vm11 = vcmp.gt.f32.partialorder %v4721_v44, 0.0  ;;  %3092 = vpow2.f32 %v2032_v48  ;;  %v3075_v18 = vpop.eup %3074 }
 0x2c6   : > { %v2040_v25 = vmul.f32 1.442695, %v1986_v13  ;;  %v2264_v5 = vadd.f32 -1.0, %v3071_v54  ;;  %v2097_v27 = vsel %vm1937_vm2, %v4703_v38, %v2262_v17  ;;  %2128 = vst [vmem:[%s4758_s5 + $0x20] sm:$0xff] %v2096_v3  ;;  %3094 = vpow2.f32 %v2034_v60  ;;  %v3077_v4 = vpop.eup %3076 }
 0x2c7   : > { %v2042_v29 = vmul.f32 1.442695, %v1987_v42  ;;  %v2265_v50 = vadd.f32 -1.0, %v3073_v1  ;;  %v2098_v22 = vsel %vm1938_vm3, %v4705_v31, %v2263_v8  ;;  %2129 = vst [vmem:[%s4758_s5 + $0x28] sm:$0xff] %v2097_v27  ;;  %3096 = vpow2.f32 %v2036_v26  ;;  %v3079_v7 = vpop.eup %3078 }
 0x2c8   : > { %v2044_v13 = vmul.f32 1.442695, %v1988_v53  ;;  %v2266_v38 = vadd.f32 -1.0, %v3075_v18  ;;  %v2099_v10 = vsel %vm1939_vm4, %v4707_v47, %v2264_v5  ;;  %2130 = vst [vmem:[%s4758_s5 + $0x30] sm:$0xff] %v2098_v22  ;;  %3098 = vpow2.f32 %v2038_v57  ;;  %v3081_v0 = vpop.eup %3080 }
 0x2c9   : > { %v2046_v42 = vmul.f32 1.442695, %v1989_v24  ;;  %v2267_v31 = vadd.f32 -1.0, %v3077_v4  ;;  %v2100_v16 = vsel %vm1940_vm5, %v4709_v19, %v2265_v50  ;;  %2131 = vst [vmem:[%s4758_s5 + $0x38] sm:$0xff] %v2099_v10  ;;  %3100 = vpow2.f32 %v2040_v25  ;;  %v3083_v48 = vpop.eup %3082 }
 0x2ca   : > { %v2048_v53 = vmul.f32 1.442695, %v1990_v59  ;;  %v2268_v47 = vadd.f32 -1.0, %v3079_v7  ;;  %v2101_v51 = vsel %vm1941_vm6, %v4711_v33, %v2266_v38  ;;  %2132 = vst [vmem:[%s4758_s5 + $0x40] sm:$0xff] %v2100_v16  ;;  %3102 = vpow2.f32 %v2042_v29  ;;  %v3085_v49 = vpop.eup %3084 }
 0x2cb   : > { %v2050_v24 = vmul.f32 1.442695, %v1991_v41  ;;  %v2269_v19 = vadd.f32 -1.0, %v3081_v0  ;;  %v2102_v32 = vsel %vm1942_vm7, %v4713_v61, %v2267_v31  ;;  %2133 = vst [vmem:[%s4758_s5 + $0x48] sm:$0xff] %v2101_v51  ;;  %3104 = vpow2.f32 %v2044_v13 }
 0x2cc   : > { %v2052_v59 = vmul.f32 1.442695, %v1992_v11  ;;  %v2270_v33 = vadd.f32 -1.0, %v3083_v48  ;;  %v2103_v23 = vsel %vm1943_vm8, %v4715_v55, %v2268_v47  ;;  %2134 = vst [vmem:[%s4758_s5 + $0x50] sm:$0xff] %v2102_v32  ;;  %v3087_v60 = vpop.eup %3086  ;;  %3106 = vpow2.f32 %v2046_v42 }
 0x2cd   : > { %v2056_v41 = vmul.f32 1.442695, %v1994_v14  ;;  %v2271_v61 = vadd.f32 -1.0, %v3085_v49  ;;  %v2104_v56 = vsel %vm1944_vm9, %v4717_v34, %v2269_v19  ;;  %2135 = vst [vmem:[%s4758_s5 + $0x58] sm:$0xff] %v2103_v23  ;;  %v3089_v52 = vpop.eup %3088  ;;  %3108 = vpow2.f32 %v2048_v53 }
 0x2ce   : > { %v2058_v11 = vmul.f32 1.442695, %v1995_v63  ;;  %v2272_v55 = vadd.f32 -1.0, %v3087_v60  ;;  %v2105_v45 = vsel %vm1945_vm10, %v4719_v20, %v2270_v33  ;;  %2136 = vst [vmem:[%s4758_s5 + $0x60] sm:$0xff] %v2104_v56  ;;  %v3091_v26 = vpop.eup %3090  ;;  %vm1947_vm12 = vcmp.gt.f32.partialorder %v4723_v35, 0.0 }
 0x2cf   : > { %3110 = vpow2.f32 %v2050_v24  ;;  %v2273_v14 = vadd.f32 -1.0, %v3089_v52  ;;  %v2106_v34 = vsel %vm1946_vm11, %v4721_v44, %v2271_v61  ;;  %2137 = vst [vmem:[%s4758_s5 + $0x68] sm:$0xff] %v2105_v45  ;;  %v3093_v17 = vpop.eup %3092  ;;  %vm1948_vm13 = vcmp.gt.f32.partialorder %v4725_v39, 0.0 }
 0x2d0   : > { %3112 = vpow2.f32 %v2052_v59  ;;  %v2274_v63 = vadd.f32 -1.0, %v3091_v26  ;;  %v2107_v20 = vsel %vm1947_vm12, %v4723_v35, %v2272_v55  ;;  %2138 = vst [vmem:[%s4758_s5 + $0x70] sm:$0xff] %v2106_v34  ;;  %v3095_v12 = vpop.eup %3094  ;;  %vm1949_vm14 = vcmp.gt.f32.partialorder %v4727_v46, 0.0 }
 0x2d1   : > { %3114 = vpow2.f32 %v2056_v41  ;;  %v2275_v54 = vadd.f32 -1.0, %v3093_v17  ;;  %v2108_v57 = vsel %vm1948_vm13, %v4725_v39, %v2273_v14  ;;  %2139 = vst [vmem:[%s4758_s5 + $0x78] sm:$0xff] %v2107_v20  ;;  %v3097_v44 = vpop.eup %3096  ;;  %vm1950_vm15 = vcmp.gt.f32.partialorder %v4729_v58, 0.0 }
 0x2d2   : > { %3116 = vpow2.f32 %v2058_v11  ;;  %v2276_v8 = vadd.f32 -1.0, %v3095_v12  ;;  %v2109_v3 = vsel %vm1949_vm14, %v4727_v46, %v2274_v63  ;;  %2140 = vst [vmem:[%s4758_s5 + $0x80] sm:$0xff] %v2108_v57  ;;  %v3099_v35 = vpop.eup %3098  ;;  %vm1951_vm0 = vcmp.gt.f32.partialorder %v4731_v28, 0.0 }
 0x2d3   : > { %v2277_v1 = vadd.f32 -1.0, %v3097_v44  ;;  %v2110_v25 = vsel %vm1950_vm15, %v4729_v58, %v2275_v54  ;;  %2141 = vst [vmem:[%s4758_s5 + $0x88] sm:$0xff] %v2109_v3  ;;  %v3101_v39 = vpop.eup %3100  ;;  %vm1952_vm1 = vcmp.gt.f32.partialorder %v4733_v43, 0.0  ;;  %v2278_v5 = vadd.f32 -1.0, %v3099_v35 }
 0x2d4   : > { %v2111_v27 = vsel %vm1951_vm0, %v4731_v28, %v2276_v8  ;;  %2142 = vst [vmem:[%s4758_s5 + $0x90] sm:$0xff] %v2110_v25  ;;  %v3103_v18 = vpop.eup %3102  ;;  %vm1953_vm2 = vcmp.gt.f32.partialorder %v4736_v37, 0.0  ;;  %v2279_v46 = vadd.f32 -1.0, %v3101_v39  ;;  %vm1954_vm3 = vcmp.gt.f32.partialorder %v4738_v36, 0.0 }
 0x2d5   : > { %v2112_v29 = vsel %vm1952_vm1, %v4733_v43, %v2277_v1  ;;  %2143 = vst [vmem:[%s4758_s5 + $0x98] sm:$0xff] %v2111_v27  ;;  %v3105_v50 = vpop.eup %3104  ;;  %v2280_v58 = vadd.f32 -1.0, %v3103_v18  ;;  %v2113_v22 = vsel %vm1953_vm2, %v4736_v37, %v2278_v5  ;;  %vm1955_vm4 = vcmp.gt.f32.partialorder %v4740_v30, 0.0 }
 0x2d6   : > { %2144 = vst [vmem:[%s4758_s5 + $0xa0] sm:$0xff] %v2112_v29  ;;  %v3107_v4 = vpop.eup %3106  ;;  %v2281_v28 = vadd.f32 -1.0, %v3105_v50  ;;  %v2114_v13 = vsel %vm1954_vm3, %v4738_v36, %v2279_v46  ;;  %2145 = vst [vmem:[%s4758_s5 + $0xa8] sm:$0xff] %v2113_v22  ;;  %vm1956_vm5 = vcmp.gt.f32.partialorder %v4742_v15, 0.0  ;;  %vm1957_vm6 = vcmp.gt.f32.partialorder %v4744_v6, 0.0 }
 0x2d7   : > { %v3109_v43 = vpop.eup %3108  ;;  %v2282_v38 = vadd.f32 -1.0, %v3107_v4  ;;  %v2115_v10 = vsel %vm1955_vm4, %v4740_v30, %v2280_v58  ;;  %2146 = vst [vmem:[%s4758_s5 + $0xb0] sm:$0xff] %v2114_v13  ;;  %vm1958_vm7 = vcmp.gt.f32.partialorder %v4746_v62, 0.0  ;;  %vm1959_vm8 = vcmp.gt.f32.partialorder %v4748_v9, 0.0 }
 0x2d8   : > { %v2283_v7 = vadd.f32 -1.0, %v3109_v43  ;;  %v2116_v42 = vsel %vm1956_vm5, %v4742_v15, %v2281_v28  ;;  %2147 = vst [vmem:[%s4758_s5 + $0xb8] sm:$0xff] %v2115_v10  ;;  %vm1960_vm9 = vcmp.gt.f32.partialorder %v4750_v2, 0.0  ;;  %vm1962_vm10 = vcmp.gt.f32.partialorder %v4752_v21, 0.0 }
 0x2d9   : > { %v3111_v37 = vpop.eup %3110  ;;  %v2117_v16 = vsel %vm1957_vm6, %v4744_v6, %v2282_v38  ;;  %2148 = vst [vmem:[%s4758_s5 + $0xc0] sm:$0xff] %v2116_v42  ;;  %vm1963_vm11 = vcmp.gt.f32.partialorder %v4754_v40, 0.0 }
 0x2da   : > { %v3113_v36 = vpop.eup %3112  ;;  %v2284_v31 = vadd.f32 -1.0, %v3111_v37  ;;  %v2118_v53 = vsel %vm1958_vm7, %v4746_v62, %v2283_v7  ;;  %2149 = vst [vmem:[%s4758_s5 + $0xc8] sm:$0xff] %v2117_v16 }
 0x2db   : > { %v3115_v30 = vpop.eup %3114  ;;  %v2285_v0 = vadd.f32 -1.0, %v3113_v36  ;;  %2150 = vst [vmem:[%s4758_s5 + $0xd0] sm:$0xff] %v2118_v53 }
 0x2dc   : > { %v3117_v15 = vpop.eup %3116  ;;  %v2287_v47 = vadd.f32 -1.0, %v3115_v30  ;;  %v2119_v6 = vsel %vm1959_vm8, %v4748_v9, %v2284_v31 }
 0x2dd   : > { %v2288_v51 = vadd.f32 -1.0, %v3117_v15  ;;  %v2120_v48 = vsel %vm1960_vm9, %v4750_v2, %v2285_v0  ;;  %2151 = vst [vmem:[%s4758_s5 + $0xd8] sm:$0xff] %v2119_v6 }
 0x2de   : > { %v2122_v62 = vsel %vm1962_vm10, %v4752_v21, %v2287_v47  ;;  %2152 = vst [vmem:[%s4758_s5 + $0xe0] sm:$0xff] %v2120_v48 }
 0x2df   : > { %v2123_v9 = vsel %vm1963_vm11, %v4754_v40, %v2288_v51  ;;  %2154 = vst [vmem:[%s4758_s5 + $0xf0] sm:$0xff] %v2122_v62 }
 0x2e0   : > { %2155 = vst [vmem:[%s4758_s5 + $0xf8] sm:$0xff] %v2123_v9 }
 0x2e1   : > { %3159 = shalt.err (!%p3156_p3)
}
 0x2e2   : > { %s3160_s24 = scalar_lea.hbm %s4932_s9, 4096  ;;  %s3164_s27 = scalar_lea.hbm %s4989_s3, 8192 }
 0x2e3   : > { %p3161_p4 = scmp.ne.s32.totalorder %s4932_s9, %s3160_s24  ;;  %p3165_p9 = scmp.lt.u32.totalorder %s4932_s9, %s4989_s3 }
 0x2e4   : > { %p3166_p10 = scmp.lt.u32.totalorder %s3164_s27, %s3160_s24  ;;  %p3168_p12 = scmp.lt.u32.totalorder %s3160_s24, %s4932_s9 }
 0x2e5   : > { %p3162_p7 = pnand %p3161_p4, %p3278_p5 }
 0x2e6   : > { %p3167_p11 = por %p3166_p10, %p3165_p9 }
 0x2e7   : > { %p3163_p8 = pneg %p3162_p7 }
 0x2e8   : > { %p3169_p13 = por %p3168_p12, %p3167_p11 }
 0x2ea   : > { %p3170_p0 = pnand %p3169_p13, %p3163_p8 }
 0x2ec   : > { %3173 = shalt.err (!%p3170_p0)
}
 0x2ed   : > { %s3219_s4 = smov 128  }
 0x2ee   : > { %2361 = dma.vmem_to_hbm [thread:$0]  (%p3278_p5), %s4937_s7, 4096, %s4932_s9, %s4944_s10, %s3219_s4, %s3219_s4, %s3211_s30  }
 0x2ef PF: > { %p2367_p1 = scmp.ge.s32.totalorder %s3208_s15, 2  ;;  %s2185_s5 = sand.u32 1, %s3196_s12  }
 0x2f0   : > { %s2186_s6 = scalar_lea.sflag [#allocation3], %s2185_s5 }
 0x2f1   : > { %p2364_p2 = pnand %p2367_p1, %p3282_p6 }
 0x2f3   : > { %3191 = dma.done.wait (!%p2364_p2), %s2186_s6, 4096  }
 0x2f4   : > { %3193 = vsyncadd (!%p2364_p2), %s2186_s6, 4294963200  ;;  %p13_p3 = scmp.ge.s32.totalorder %s3265_s18, 4   ;;  %s5052_s12 = smov %s3200_s13 }
 0x2f5   : > { %s5053_s13 = smov %s3204_s14  ;;  %s5054_s14 = smov %s3276_s21 }
 0x2f6   : > { %s5055_s15 = smov %s3265_s18  ;;  %15 = sbr.rel (!%p13_p3) target bundleno = 3 (0x3), region = 67 }
 0x2fd   :  { %2191 = vsyncpa [#allocation3], 1 }
 0x2fe   :  { %2193 = vsyncpa [#allocation3 + $0x1], 1 }

</bundles_post_ra>
